<compile_context>
chip_gen: v7x
topology: tpu7x:2x2x1
jax: 0.10.0
libtpu: 0.0.40
codegen_flags: <defaults>
</compile_context>

<pallas_src>
import jax
import jax.numpy as jnp
from jax.experimental import pallas as pl
from jax.experimental.pallas import tpu as pltpu


def intent_kernel(tok_ids_smem,      # (B*S,) int32   [scalar prefetch, SMEM]
                  tok_emb_hbm,       # (V, H) f32     [memory_space=pl.ANY -> HBM]
                  valid_len_ref,     # (Bt, 1) int32
                  seg_ids_ref,       # (Bt, S) int32
                  seg_tbl_ref,       # (2, H) bf16
                  pooler_w_ref,      # (H, H) bf16
                  pooler_b_ref,      # (1, H) f32
                  cls_w_ref,         # (H, Cpad) bf16
                  cls_b_ref,         # (1, Cpad) f32
                  out_ref,           # (Bt, Cpad) f32
                  emb_vmem,          # (Bt*S, H) f32 scratch (gathered rows)
                  dma_sem):          # DMA completion semaphore
    bt, seq = seg_ids_ref.shape
    n_tok, hidden = emb_vmem.shape
    base = pl.program_id(0) * n_tok

    # ---- token-embedding row gather: HBM -> VMEM via per-row async DMAs ------
    # Token ids live in SMEM (scalar prefetch); the (V, H) table never enters
    # VMEM.  A bounded window of DMAs is kept in flight.
    inflight = min(16, n_tok)

    def issue(t):
        row = tok_ids_smem[base + t]
        pltpu.make_async_copy(tok_emb_hbm.at[pl.ds(row, 1), :],
                              emb_vmem.at[pl.ds(t, 1), :],
                              dma_sem).start()

    @pl.loop(0, inflight)
    def _prime(t):
        issue(t)

    @pl.loop(0, n_tok)
    def _gather(t):
        # Wait for one row's worth of DMA completion (shape-only descriptor),
        # then keep the in-flight window full.
        pltpu.make_async_copy(tok_emb_hbm.at[pl.ds(0, 1), :],
                              emb_vmem.at[pl.ds(t, 1), :],
                              dma_sem).wait()

        @pl.when(t + inflight < n_tok)
        def _():
            issue(t + inflight)

    tok = emb_vmem[...].reshape(bt, seq, hidden)                      # (Bt,S,H) f32

    # ---- segment embedding: lerp between the two table rows (no where-select) -
    seg0 = seg_tbl_ref[0:1, :].astype(jnp.float32)                    # (1, H)
    dseg = seg_tbl_ref[1:2, :].astype(jnp.float32) - seg0             # (1, H)
    seg_f = seg_ids_ref[...].astype(jnp.float32)[:, :, None]          # (Bt,S,1)
    hidden_bsh = tok + (seg0 + seg_f * dseg)                          # (Bt,S,H)

    # ---- gen_attention_mask + masked mean-pool (VPU multiply + XLU reduce) ----
    vlen = valid_len_ref[...]                                         # (Bt, 1) int32
    pos = jax.lax.broadcasted_iota(jnp.int32, (bt, seq), 1)           # (Bt, S)
    mask = (pos < vlen).astype(jnp.float32)[:, :, None]               # (Bt,S,1)
    msum = jnp.sum(hidden_bsh * mask, axis=1)                         # (Bt, H)
    denom = jnp.maximum(vlen.astype(jnp.float32), 1.0)                # (Bt, 1)
    pooled = msum / denom                                             # (Bt, H)

    # ---- BERT-style pooler head: tanh(pooled @ W_p + b_p)  (bf16 MXU, f32 acc)
    pooler = jnp.tanh(
        jnp.dot(pooled.astype(jnp.bfloat16), pooler_w_ref[...],
                preferred_element_type=jnp.float32)
        + pooler_b_ref[...])                                          # (Bt, H) f32

    # ---- classifier: Linear(H -> C), lane-dense (C padded to 128) -------------
    out_ref[...] = (jnp.dot(pooler.astype(jnp.bfloat16), cls_w_ref[...],
                            preferred_element_type=jnp.float32)
                    + cls_b_ref[...])                                 # (Bt, Cpad)


def _pick_batch_tile(batch):
    """Largest multiple-of-8 divisor of `batch` <= min(256, batch//2): fills the
    MXU M-dim while keeping >= 2 grid steps (both v7x TensorCores get work)."""
    if batch < 16:
        return batch
    cap = min(256, batch // 2)
    for bt in range(cap, 0, -1):
        if batch % bt == 0 and bt % 8 == 0:
            return bt
    return batch


def intent_classifier_forward(token_ids, valid_length, segment_ids, params):
    B, S = token_ids.shape
    V, H = params["tok_emb"].shape
    c_pad = params["cls_w"].shape[1]
    C = params["num_classes"]

    Bt = _pick_batch_tile(B)
    grid = (B // Bt,)

    tok_flat = token_ids.astype(jnp.int32).reshape(B * S)      # -> SMEM prefetch
    seg_ids = segment_ids.astype(jnp.int32)                    # (B, S)
    valid_len = valid_length.astype(jnp.int32).reshape(B, 1)   # (B, 1)

    # Post-gather-rewrite cost: no V factor anywhere.
    flops = (2 * B * S * H          # mask multiply + S reduction
             + 2 * B * H * H        # pooler dense
             + 2 * B * H * c_pad)   # classifier
    bytes_accessed = (B * S * H * 4          # gathered embedding rows (f32)
                      + B * S * 4 * 2        # token + segment ids
                      + B * 4                # valid_length
                      + 2 * H * 2            # segment table
                      + H * H * 2 + H * 4    # pooler w/b
                      + H * c_pad * 2 + c_pad * 4
                      + B * c_pad * 4)       # logits out

    grid_spec = pltpu.PrefetchScalarGridSpec(
        num_scalar_prefetch=1,                                 # token ids -> SMEM
        grid=grid,
        in_specs=[
            pl.BlockSpec(memory_space=pl.ANY),                 # tok_emb stays in HBM
            pl.BlockSpec((Bt, 1), lambda i, tok: (i, 0)),      # valid_length
            pl.BlockSpec((Bt, S), lambda i, tok: (i, 0)),      # segment ids
            pl.BlockSpec((2, H), lambda i, tok: (0, 0)),       # segment table (bf16)
            pl.BlockSpec((H, H), lambda i, tok: (0, 0)),       # pooler_w (bf16)
            pl.BlockSpec((1, H), lambda i, tok: (0, 0)),       # pooler_b (f32)
            pl.BlockSpec((H, c_pad), lambda i, tok: (0, 0)),   # cls_w (bf16, padded)
            pl.BlockSpec((1, c_pad), lambda i, tok: (0, 0)),   # cls_b (f32, padded)
        ],
        out_specs=pl.BlockSpec((Bt, c_pad), lambda i, tok: (i, 0)),
        scratch_shapes=[
            pltpu.VMEM((Bt * S, H), jnp.float32),              # gathered rows
            pltpu.SemaphoreType.DMA,                           # gather completion
        ],
    )

    logits_padded = pl.pallas_call(
        intent_kernel,
        out_shape=jax.ShapeDtypeStruct((B, c_pad), jnp.float32),
        grid_spec=grid_spec,
        compiler_params=pltpu.CompilerParams(
            dimension_semantics=("parallel",),
            # Resident footprint is only gathered rows + small weights (the
            # (V, H) table never enters VMEM), so 32 MiB is ample even at
            # production H and fits v7x's 64 MiB physical VMEM.
            vmem_limit_bytes=32 * 1024 * 1024,
        ),
        cost_estimate=pl.CostEstimate(
            flops=flops, transcendentals=B * H, bytes_accessed=bytes_accessed),
    )(tok_flat, params["tok_emb"], valid_len, seg_ids,
      params["seg_emb"], params["pooler_w"], params["pooler_b"],
      params["cls_w"], params["cls_b"])

    return logits_padded[:, :C]


def make_params(key, vocab_size, hidden_size, num_classes):
    k = jax.random.split(key, 4)
    scale = 0.02
    c_pad = ((num_classes + 127) // 128) * 128   # lane-dense classifier width
    cls_w = scale * jax.random.normal(k[3], (hidden_size, num_classes), jnp.float32)
    cls_w_pad = jnp.zeros((hidden_size, c_pad), jnp.float32).at[:, :num_classes].set(cls_w)
    return {
        # Embedding table stays f32 in HBM (sublane-granular row DMAs);
        # matmul weights stored bf16 (MXU-native), biases f32.
        "tok_emb":  scale * jax.random.normal(k[0], (vocab_size, hidden_size),
                                              jnp.float32),
        "seg_emb":  (scale * jax.random.normal(k[1], (2, hidden_size),
                                               jnp.float32)).astype(jnp.bfloat16),
        "pooler_w": (scale * jax.random.normal(k[2], (hidden_size, hidden_size),
                                               jnp.float32)).astype(jnp.bfloat16),
        "pooler_b": jnp.zeros((1, hidden_size), jnp.float32),
        "cls_w":    cls_w_pad.astype(jnp.bfloat16),
        "cls_b":    jnp.zeros((1, c_pad), jnp.float32),
        "num_classes": num_classes,
    }


if __name__ == "__main__":
    # Small shapes consistent with the module (hidden shrunk 768 -> 128);
    # B chosen so the batch tiling gives 2 parallel grid steps.
    B, S, H, V, C = 32, 16, 128, 64, 3

    key = jax.random.PRNGKey(0)
    k_tok, k_seg, k_len, k_par = jax.random.split(key, 4)

    token_ids = jax.random.randint(k_tok, (B, S), 0, V, dtype=jnp.int32)
    segment_ids = jax.random.randint(k_seg, (B, S), 0, 2, dtype=jnp.int32)
    valid_length = jax.random.randint(k_len, (B,), 1, S + 1, dtype=jnp.int32)

    params = make_params(k_par, V, H, C)

    logits = intent_classifier_forward(token_ids, valid_length, segment_ids, params)
    logits = jax.block_until_ready(logits)
    assert logits.shape == (B, C) and logits.dtype == jnp.float32
    print("KERNEL_OK")
</pallas_src>

<mosaic_0001>
module attributes {stable_mosaic.version = 11 : i64} {
  func.func @intent_kernel(%arg0: i32, %arg1: memref<512xi32, #tpu.memory_space<smem>>, %arg2: memref<64x128xf32, #tpu.memory_space<any>>, %arg3: memref<16x1xi32, #tpu.memory_space<vmem>>, %arg4: memref<16x16xi32, #tpu.memory_space<vmem>>, %arg5: memref<2x128xbf16, #tpu.memory_space<vmem>>, %arg6: memref<128x128xbf16, #tpu.memory_space<vmem>>, %arg7: memref<1x128xf32, #tpu.memory_space<vmem>>, %arg8: memref<128x128xbf16, #tpu.memory_space<vmem>>, %arg9: memref<1x128xf32, #tpu.memory_space<vmem>>, %arg10: memref<16x128xf32, #tpu.memory_space<vmem>>, %arg11: memref<256x128xf32, #tpu.memory_space<vmem>>, %arg12: memref<!tpu.dma_semaphore, #tpu.memory_space<semaphore_mem>>) attributes {dimension_semantics = [#tpu.dimension_semantics<parallel>], iteration_bounds = array<i64: 2>, scalar_prefetch = 1 : i64, scratch_operands = 2 : i64, tpu.core_type = #tpu.core_type<tc>, window_params = [{}, {transform_indices = @transform_1, window_bounds = array<i64: 16, 1>}, {transform_indices = @transform_2, window_bounds = array<i64: 16, 16>}, {pipeline_mode = #tpu.pipeline_mode<synchronous>, transform_indices = @transform_3, window_bounds = array<i64: 2, 128>}, {pipeline_mode = #tpu.pipeline_mode<synchronous>, transform_indices = @transform_4, window_bounds = array<i64: 128, 128>}, {pipeline_mode = #tpu.pipeline_mode<synchronous>, transform_indices = @transform_5, window_bounds = array<i64: 1, 128>}, {pipeline_mode = #tpu.pipeline_mode<synchronous>, transform_indices = @transform_6, window_bounds = array<i64: 128, 128>}, {pipeline_mode = #tpu.pipeline_mode<synchronous>, transform_indices = @transform_7, window_bounds = array<i64: 1, 128>}, {transform_indices = @transform_8, window_bounds = array<i64: 16, 128>}]} {
    %c256_i32 = arith.constant 256 : i32
    %0 = arith.muli %arg0, %c256_i32 : i32
    %c0_i32 = arith.constant 0 : i32
    %c16_i32 = arith.constant 16 : i32
    %1 = arith.addi %c0_i32, %c16_i32 : i32
    %c1_i32 = arith.constant 1 : i32
    scf.for %arg13 = %c0_i32 to %1 step %c1_i32  : i32 {
      %c1_i32_26 = arith.constant 1 : i32
      %50 = arith.muli %arg13, %c1_i32_26 : i32
      %c0_i32_27 = arith.constant 0 : i32
      %51 = arith.addi %c0_i32_27, %50 : i32
      %52 = arith.addi %0, %51 : i32
      %53 = arith.index_cast %52 : i32 to index
      %54 = memref.load %arg1[%53] : memref<512xi32, #tpu.memory_space<smem>>
      %c0_i32_28 = arith.constant 0 : i32
      %55 = tpu.memref_slice %arg2[%54, %c0_i32_28] : memref<64x128xf32, #tpu.memory_space<any>> -> memref<1x128xf32, #tpu.memory_space<any>>
      %c0_i32_29 = arith.constant 0 : i32
      %56 = tpu.memref_slice %arg11[%51, %c0_i32_29] : memref<256x128xf32, #tpu.memory_space<vmem>> -> memref<1x128xf32, #tpu.memory_space<vmem>>
      tpu.enqueue_dma source(%55 : memref<1x128xf32, #tpu.memory_space<any>>) target(%56 : memref<1x128xf32, #tpu.memory_space<vmem>>) target_semaphore(%arg12 : memref<!tpu.dma_semaphore, #tpu.memory_space<semaphore_mem>>)
    }
    %c16_i32_0 = arith.constant 16 : i32
    %c0_i32_1 = arith.constant 0 : i32
    %c256_i32_2 = arith.constant 256 : i32
    %2 = arith.addi %c0_i32_1, %c256_i32_2 : i32
    %c1_i32_3 = arith.constant 1 : i32
    scf.for %arg13 = %c0_i32_1 to %2 step %c1_i32_3  : i32 {
      %c1_i32_26 = arith.constant 1 : i32
      %50 = arith.muli %arg13, %c1_i32_26 : i32
      %c0_i32_27 = arith.constant 0 : i32
      %51 = arith.addi %c0_i32_27, %50 : i32
      %c0_i32_28 = arith.constant 0 : i32
      %c0_i32_29 = arith.constant 0 : i32
      %52 = tpu.memref_slice %arg2[%c0_i32_28, %c0_i32_29] : memref<64x128xf32, #tpu.memory_space<any>> -> memref<1x128xf32, #tpu.memory_space<any>>
      %c0_i32_30 = arith.constant 0 : i32
      %53 = tpu.memref_slice %arg11[%51, %c0_i32_30] : memref<256x128xf32, #tpu.memory_space<vmem>> -> memref<1x128xf32, #tpu.memory_space<vmem>>
      tpu.wait_dma2 semaphore(%arg12 : memref<!tpu.dma_semaphore, #tpu.memory_space<semaphore_mem>>) src(%52 : memref<1x128xf32, #tpu.memory_space<any>>) dst(%53 : memref<1x128xf32, #tpu.memory_space<vmem>>)
      %c16_i32_31 = arith.constant 16 : i32
      %54 = arith.addi %51, %c16_i32_31 : i32
      %c256_i32_32 = arith.constant 256 : i32
      %55 = arith.cmpi slt, %54, %c256_i32_32 : i32
      %56 = arith.extui %55 : i1 to i32
      %c0_i32_33 = arith.constant 0 : i32
      %57 = arith.cmpi ne, %56, %c0_i32_33 : i32
      scf.if %57 {
        %c16_i32_34 = arith.constant 16 : i32
        %58 = arith.addi %51, %c16_i32_34 : i32
        %59 = arith.addi %0, %58 : i32
        %60 = arith.index_cast %59 : i32 to index
        %61 = memref.load %arg1[%60] : memref<512xi32, #tpu.memory_space<smem>>
        %c0_i32_35 = arith.constant 0 : i32
        %62 = tpu.memref_slice %arg2[%61, %c0_i32_35] : memref<64x128xf32, #tpu.memory_space<any>> -> memref<1x128xf32, #tpu.memory_space<any>>
        %c0_i32_36 = arith.constant 0 : i32
        %63 = tpu.memref_slice %arg11[%58, %c0_i32_36] : memref<256x128xf32, #tpu.memory_space<vmem>> -> memref<1x128xf32, #tpu.memory_space<vmem>>
        tpu.enqueue_dma source(%62 : memref<1x128xf32, #tpu.memory_space<any>>) target(%63 : memref<1x128xf32, #tpu.memory_space<vmem>>) target_semaphore(%arg12 : memref<!tpu.dma_semaphore, #tpu.memory_space<semaphore_mem>>)
      } else {
      }
    }
    %c256_i32_4 = arith.constant 256 : i32
    %c0 = arith.constant 0 : index
    %c0_5 = arith.constant 0 : index
    %3 = vector.load %arg11[%c0, %c0_5] : memref<256x128xf32, #tpu.memory_space<vmem>>, vector<256x128xf32>
    %4 = vector.shape_cast %3 : vector<256x128xf32> to vector<16x16x128xf32>
    %c0_6 = arith.constant 0 : index
    %c0_7 = arith.constant 0 : index
    %5 = vector.load %arg5[%c0_6, %c0_7] : memref<2x128xbf16, #tpu.memory_space<vmem>>, vector<1x128xbf16>
    %6 = arith.extf %5 : vector<1x128xbf16> to vector<1x128xf32>
    %c1 = arith.constant 1 : index
    %c0_8 = arith.constant 0 : index
    %7 = vector.load %arg5[%c1, %c0_8] : memref<2x128xbf16, #tpu.memory_space<vmem>>, vector<1x128xbf16>
    %8 = arith.extf %7 : vector<1x128xbf16> to vector<1x128xf32>
    %9 = arith.subf %8, %6 : vector<1x128xf32>
    %c0_9 = arith.constant 0 : index
    %c0_10 = arith.constant 0 : index
    %10 = vector.load %arg4[%c0_9, %c0_10] : memref<16x16xi32, #tpu.memory_space<vmem>>, vector<16x16xi32>
    %11 = arith.sitofp %10 : vector<16x16xi32> to vector<16x16xf32>
    %12 = vector.shape_cast %11 : vector<16x16xf32> to vector<16x16x1xf32>
    %13 = vector.shape_cast %9 : vector<1x128xf32> to vector<1x1x128xf32>
    %14 = vector.broadcast %12 : vector<16x16x1xf32> to vector<16x16x128xf32>
    %15 = vector.broadcast %13 : vector<1x1x128xf32> to vector<16x16x128xf32>
    %16 = arith.mulf %14, %15 : vector<16x16x128xf32>
    %17 = vector.shape_cast %6 : vector<1x128xf32> to vector<1x1x128xf32>
    %18 = vector.broadcast %17 : vector<1x1x128xf32> to vector<16x16x128xf32>
    %19 = arith.addf %18, %16 : vector<16x16x128xf32>
    %20 = arith.addf %4, %19 : vector<16x16x128xf32>
    %c0_11 = arith.constant 0 : index
    %c0_12 = arith.constant 0 : index
    %21 = vector.load %arg3[%c0_11, %c0_12] : memref<16x1xi32, #tpu.memory_space<vmem>>, vector<16x1xi32>
    %22 = tpu.iota {dimensions = array<i32: 1>} : vector<16x16xi32>
    %23 = vector.broadcast %21 : vector<16x1xi32> to vector<16x16xi32>
    %24 = arith.cmpi slt, %22, %23 : vector<16x16xi32>
    %25 = arith.extui %24 : vector<16x16xi1> to vector<16x16xi32>
    %26 = arith.sitofp %25 : vector<16x16xi32> to vector<16x16xf32>
    %27 = vector.shape_cast %26 : vector<16x16xf32> to vector<16x16x1xf32>
    %28 = vector.broadcast %27 : vector<16x16x1xf32> to vector<16x16x128xf32>
    %29 = arith.mulf %20, %28 : vector<16x16x128xf32>
    %cst = arith.constant dense<0.000000e+00> : vector<16x128xf32>
    %30 = vector.multi_reduction <add>, %29, %cst [1] : vector<16x16x128xf32> to vector<16x128xf32>
    %31 = arith.sitofp %21 : vector<16x1xi32> to vector<16x1xf32>
    %cst_13 = arith.constant 1.000000e+00 : f32
    %32 = vector.broadcast %cst_13 : f32 to vector<16x1xf32>
    %33 = arith.maximumf %31, %32 : vector<16x1xf32>
    %34 = vector.broadcast %33 : vector<16x1xf32> to vector<16x128xf32>
    %35 = arith.divf %30, %34 : vector<16x128xf32>
    %36 = arith.truncf %35 : vector<16x128xf32> to vector<16x128xbf16>
    %c0_14 = arith.constant 0 : index
    %c0_15 = arith.constant 0 : index
    %37 = vector.load %arg6[%c0_14, %c0_15] : memref<128x128xbf16, #tpu.memory_space<vmem>>, vector<128x128xbf16>
    %cst_16 = arith.constant dense<0.000000e+00> : vector<16x128xf32>
    %38 = tpu.matmul %36, %37, %cst_16 {dimension_numbers = #tpu.dot_dimension_numbers<[1], [0], [0], [1], [0, 0, 1, 1], [], []>} : vector<16x128xbf16>, vector<128x128xbf16>, vector<16x128xf32> -> vector<16x128xf32>
    %c0_17 = arith.constant 0 : index
    %c0_18 = arith.constant 0 : index
    %39 = vector.load %arg7[%c0_17, %c0_18] : memref<1x128xf32, #tpu.memory_space<vmem>>, vector<1x128xf32>
    %40 = vector.broadcast %39 : vector<1x128xf32> to vector<16x128xf32>
    %41 = arith.addf %38, %40 : vector<16x128xf32>
    %42 = math.tanh %41 : vector<16x128xf32>
    %43 = arith.truncf %42 : vector<16x128xf32> to vector<16x128xbf16>
    %c0_19 = arith.constant 0 : index
    %c0_20 = arith.constant 0 : index
    %44 = vector.load %arg8[%c0_19, %c0_20] : memref<128x128xbf16, #tpu.memory_space<vmem>>, vector<128x128xbf16>
    %cst_21 = arith.constant dense<0.000000e+00> : vector<16x128xf32>
    %45 = tpu.matmul %43, %44, %cst_21 {dimension_numbers = #tpu.dot_dimension_numbers<[1], [0], [0], [1], [0, 0, 1, 1], [], []>} : vector<16x128xbf16>, vector<128x128xbf16>, vector<16x128xf32> -> vector<16x128xf32>
    %c0_22 = arith.constant 0 : index
    %c0_23 = arith.constant 0 : index
    %46 = vector.load %arg9[%c0_22, %c0_23] : memref<1x128xf32, #tpu.memory_space<vmem>>, vector<1x128xf32>
    %47 = vector.broadcast %46 : vector<1x128xf32> to vector<16x128xf32>
    %48 = arith.addf %45, %47 : vector<16x128xf32>
    %c0_24 = arith.constant 0 : index
    %c0_25 = arith.constant 0 : index
    %49 = vector.load %arg10[%c0_24, %c0_25] : memref<16x128xf32, #tpu.memory_space<vmem>>, vector<16x128xf32>
    tpu.vector_store %arg10[%c0_24, %c0_25], %48 {strides = array<i32>} : memref<16x128xf32, #tpu.memory_space<vmem>>, vector<16x128xf32>,
    return
  }
  func.func @transform_1(%arg0: i32, %arg1: memref<512xi32, #tpu.memory_space<smem>>) -> (i32, i32) {
    %c0_i32 = arith.constant 0 : i32
    %c0_i32_0 = arith.constant 0 : i32
    return %arg0, %c0_i32 : i32, i32
  }
  func.func @transform_2(%arg0: i32, %arg1: memref<512xi32, #tpu.memory_space<smem>>) -> (i32, i32) {
    %c0_i32 = arith.constant 0 : i32
    %c0_i32_0 = arith.constant 0 : i32
    return %arg0, %c0_i32 : i32, i32
  }
  func.func @transform_3(%arg0: i32, %arg1: memref<512xi32, #tpu.memory_space<smem>>) -> (i32, i32) {
    %c0_i32 = arith.constant 0 : i32
    %c0_i32_0 = arith.constant 0 : i32
    %c0_i32_1 = arith.constant 0 : i32
    return %c0_i32, %c0_i32_0 : i32, i32
  }
  func.func @transform_4(%arg0: i32, %arg1: memref<512xi32, #tpu.memory_space<smem>>) -> (i32, i32) {
    %c0_i32 = arith.constant 0 : i32
    %c0_i32_0 = arith.constant 0 : i32
    %c0_i32_1 = arith.constant 0 : i32
    return %c0_i32, %c0_i32_0 : i32, i32
  }
  func.func @transform_5(%arg0: i32, %arg1: memref<512xi32, #tpu.memory_space<smem>>) -> (i32, i32) {
    %c0_i32 = arith.constant 0 : i32
    %c0_i32_0 = arith.constant 0 : i32
    %c0_i32_1 = arith.constant 0 : i32
    return %c0_i32, %c0_i32_0 : i32, i32
  }
  func.func @transform_6(%arg0: i32, %arg1: memref<512xi32, #tpu.memory_space<smem>>) -> (i32, i32) {
    %c0_i32 = arith.constant 0 : i32
    %c0_i32_0 = arith.constant 0 : i32
    %c0_i32_1 = arith.constant 0 : i32
    return %c0_i32, %c0_i32_0 : i32, i32
  }
  func.func @transform_7(%arg0: i32, %arg1: memref<512xi32, #tpu.memory_space<smem>>) -> (i32, i32) {
    %c0_i32 = arith.constant 0 : i32
    %c0_i32_0 = arith.constant 0 : i32
    %c0_i32_1 = arith.constant 0 : i32
    return %c0_i32, %c0_i32_0 : i32, i32
  }
  func.func @transform_8(%arg0: i32, %arg1: memref<512xi32, #tpu.memory_space<smem>>) -> (i32, i32) {
    %c0_i32 = arith.constant 0 : i32
    %c0_i32_0 = arith.constant 0 : i32
    return %arg0, %c0_i32 : i32, i32
  }
}

</mosaic_0001>

<bundles_post_ra>
// kernel: tpu_custom_call.1
= control target key start
LH: loop header
LB: loop body
LE: loop exit
PB: predicated region body
PF: predicated region fallthrough
CT: control target
= control target key end

     0   :  { %s2763_s0 = inlined_call_operand.vmem [shape: s32[512], index: 0, kind: input, shape index: {}]   ;;  %s2764_s1 = inlined_call_operand.vmem [shape: f32[64,128], index: 1, kind: input, shape index: {}]   ;;  %s2765_s2 = inlined_call_operand.vmem [shape: s32[32,1], index: 2, kind: input, shape index: {}]   ;;  %s2766_s3 = inlined_call_operand.vmem [shape: s32[32,16], index: 3, kind: input, shape index: {}]   ;;  %s2767_s4 = inlined_call_operand.vmem [shape: bf16[2,128], index: 4, kind: input, shape index: {}]   ;;  %s2768_s5 = inlined_call_operand.hbm [shape: bf16[128,128], index: 5, kind: input, shape index: {}]   ;;  %s2769_s6 = inlined_call_operand.vmem [shape: f32[1,128], index: 6, kind: input, shape index: {}]   ;;  %s2770_s7 = inlined_call_operand.hbm [shape: bf16[128,128], index: 7, kind: input, shape index: {}]   ;;  %s2771_s8 = inlined_call_operand.vmem [shape: f32[1,128], index: 8, kind: input, shape index: {}]   ;;  %s2772_s9 = inlined_call_operand.hbm [shape: f32[32,128], index: 9, kind: output, shape index: {}]  }
   0x1   :  { %s14_s11 = sshll.u32 %s2763_s0, 4  ;;  %s15_s11 = int_to_ptr.vmem [resolvable:$true] %s14_s11 }
   0x2   :  { %s1896_s12 = scalar_lea.vmem %s15_s11, 64  ;;  %p1901_p1 = scmp.lt.s32.totalorder %s15_s11, %s15_s11 }
   0x3   :  { %p1897_p0 = scmp.ne.s32.totalorder %s15_s11, %s1896_s12  ;;  %p1902_p2 = scmp.lt.s32.totalorder %s1896_s12, %s1896_s12 }
   0x5   :  { %p1903_p3 = por %p1902_p2, %p1901_p1 }
   0x7   :  { %p1904_p4 = pnand %p1903_p3, %p1897_p0 }
   0x9   :  { %1907 = shalt.err (!%p1904_p4)  }
   0xa   :  { %s2056_s13 = smov [#allocation5]  }
   0xb   :  { %17 = dma.vmem_to_smem %s15_s11, 64, %s2056_s13, [#allocation4] }
   0xc   :  { %2016 = dma.done.wait [#allocation4], 64 }
   0xd   :  { %2017 = vsyncadd [#allocation4], 4294967232 }
   0xe   :  { %19 = sfence }
   0xf   :  { %20 = vsyncpa [#allocation7], 0 }
  0x10   :  { %21 = vsyncpa [#allocation10], 0 }
  0x11   :  { %22 = vsyncpa [#allocation8], 0 }
  0x12   :  { %24 = vsyncpa [#allocation8 + $0x1], 0  ;;  %s2120_s14 = smov 0   ;;  %s2122_s0 = smov 0  }
  0x13   :  { %s2124_s15 = smov 0   ;;  %s2126_s16 = smov 0  }
  0x14 LB: > { %2777 = sst [smem:[#allocation19_spill]] %s2042_s15  ;;  %s2141_s17 = sadd.s32 4294967295, %s2046_s16   ;;  %s2046_s16 = sphi %s2126_s16, %s2794_s16   ;;  %s2042_s15 = sphi %s2124_s15, %s2791_s15   ;;  %s2038_s0 = sphi %s2122_s0, %s2793_s0   ;;  %s2034_s14 = sphi %s2120_s14, %s2792_s14  }
  0x15   : > { %s1656_s18 = sadd.s32 4294967294, %s2046_s16   ;;  %s2145_s19 = sadd.s32 1, %s2046_s16  }
  0x16   : > { %s194_s20 = sadd.s32 1, %s2042_s15  ;;  %s191_s21 = ssub.s32 %s2046_s16, %s2145_s19 }
  0x17   : > { %p204_p5 = scmp.ne.s32.totalorder %s2042_s15, %s2038_s0  ;;  %p192_p6 = scmp.eq.s32.totalorder %s191_s21, 0 }
  0x18   : > { %p205_p7 = scmp.eq.s32.totalorder %s2141_s17, 1  ;;  %p210_p8 = scmp.ne.s32.totalorder %s2038_s0, %s2034_s14 }
  0x19   : > { %p211_p9 = scmp.eq.s32.totalorder %s1656_s18, 1  ;;  %p1657_p12 = scmp.ge.s32.totalorder %s2046_s16, 1 }
  0x1a   : > { %s2156_s22 = scalar_select %p192_p6, %s2042_s15, %s194_s20  }
  0x1b   : > { %p2158_p10 = por %p205_p7, %p204_p5  ;;  %p2162_p11 = por %p211_p9, %p210_p8 }
  0x1c   : > { %2778 = sst [smem:[#allocation20_spill]] %s2156_s22  ;;  %p218_p13 = scmp.lt.s32.totalorder %s2046_s16, 3 }
  0x1d   : > { %s2779_s23 = scalar_select %p2158_p10, 1, 0 }
  0x1e   : > { %s2780_s24 = scalar_select %p2162_p11, 1, 0 }
  0x1f   : > { %p2773_p0 = scmp.eq.s32.totalorder %s2141_s17, 0  ;;  %p2169_p1 = pnand %p1657_p12, %p218_p13 }
  0x20   : > { %s2057_s26 = smov [#allocation6]   ;;  %s2058_s29 = smov [#allocation9]  }
  0x21   : > { %s2781_s25 = scalar_select %p2169_p1, 1, 0 }
  0x22   : > { %s233_s27 = sshll.u32 %s2057_s26, 4  ;;  %p1768_p2 = pneg %p2169_p1  ;;  %s234_s27 = int_to_ptr.vmem [resolvable:$true] %s233_s27 }
  0x23   : > { %s249_s30 = sshll.u32 %s2058_s29, 4  ;;  %s1908_s12 = scalar_lea.hbm %s2768_s5, 1024  ;;  %s2181_s30 = int_to_ptr.vmem [resolvable:$true] %s249_s30 }
  0x24   : > { %p2177_p3 = pnand %p2773_p0, %p1768_p2  ;;  %p1909_p4 = scmp.ne.s32.totalorder %s2768_s5, %s1908_s12 }
  0x25   : > { %p1915_p8 = scmp.lt.u32.totalorder %s1908_s12, %s2768_s5 }
  0x26   : > { %p1910_p5 = pneg %p2177_p3 }
  0x28   : > { %p1911_p6 = pnand %p1910_p5, %p1909_p4 }
  0x2a   : > { %p1912_p7 = pneg %p1911_p6 }
  0x2c   : > { %p1917_p9 = pnand %p1915_p8, %p1912_p7 }
  0x2e   : > { %1920 = shalt.err (!%p1917_p9)
}
  0x2f   : > { %s1921_s26 = scalar_lea.vmem %s234_s27, 1024  ;;  %p1929_p0 = scmp.lt.s32.totalorder %s234_s27, %s234_s27 }
  0x30   : > { %p1922_p12 = scmp.ne.s32.totalorder %s234_s27, %s1921_s26  ;;  %p1930_p11 = scmp.lt.s32.totalorder %s1921_s26, %s1921_s26 }
  0x32   : > { %p1924_p13 = pnand %p1922_p12, %p1910_p5  ;;  %p1931_p10 = por %p1930_p11, %p1929_p0 }
  0x34   : > { %p1925_p2 = pneg %p1924_p13 }
  0x36   : > { %p1932_p1 = pnand %p1931_p10, %p1925_p2 }
  0x38   : > { %1935 = shalt.err (!%p1932_p1)
}
  0x39   : > { %s2059_s29 = smov 64   ;;  %s2060_s10 = smov 4  }
  0x3a   : > { %1771 = dma.hbm_to_vmem [thread:$0]  (!%p2177_p3), %s2768_s5, 1024, %s234_s27, [#allocation7], %s2059_s29, %s2059_s29, %s2060_s10  }
  0x3b   : > { %s1936_s20 = scalar_lea.hbm %s2770_s7, 1024 }
  0x3c   : > { %p1937_p4 = scmp.ne.s32.totalorder %s2770_s7, %s1936_s20  ;;  %p1943_p0 = scmp.lt.u32.totalorder %s1936_s20, %s2770_s7 }
  0x3e   : > { %p1939_p10 = pnand %p1937_p4, %p1910_p5 }
  0x40   : > { %p1940_p11 = pneg %p1939_p10 }
  0x42   : > { %p1945_p1 = pnand %p1943_p0, %p1940_p11 }
  0x44   : > { %1948 = shalt.err (!%p1945_p1)
}
  0x45   : > { %s1949_s27 = scalar_lea.vmem %s2181_s30, 1024  ;;  %p1957_p9 = scmp.lt.s32.totalorder %s2181_s30, %s2181_s30 }
  0x46   : > { %p1950_p6 = scmp.ne.s32.totalorder %s2181_s30, %s1949_s27  ;;  %p1958_p12 = scmp.lt.s32.totalorder %s1949_s27, %s1949_s27 }
  0x48   : > { %p1952_p7 = pnand %p1950_p6, %p1910_p5  ;;  %p1959_p13 = por %p1958_p12, %p1957_p9 }
  0x4a   : > { %p1953_p8 = pneg %p1952_p7 }
  0x4c   : > { %p1960_p2 = pnand %p1959_p13, %p1953_p8 }
  0x4e   : > { %1963 = shalt.err (!%p1960_p2)
}
  0x4f   : > { %1774 = dma.hbm_to_vmem [thread:$0]  (!%p2177_p3), %s2770_s7, 1024, %s2181_s30, [#allocation10], %s2059_s29, %s2059_s29, %s2060_s10  }
  0x50   : > { %p2783_p4 = scmp.ne.s32.totalorder %s2781_s25, 0 }
  0x51   : > { %p2784_p10 = scmp.eq.s32.totalorder (!%p2783_p4), %s2141_s17, 0 }
  0x52   : > { %286 = sbr.rel (%p2783_p4) target bundleno = 933 (0x3a5), region = 48 }
  0x59   : > { %2019 = dma.done.wait (%p2784_p10), [#allocation7], 1024   ;;  %p2785_p5 = pmov %p2784_p10 }
  0x5b   : > { %2021 = vsyncadd (%p2785_p5), [#allocation7], 4294966272  ;;  %p2786_p11 = pmov %p2785_p5 }
  0x5c   : > { %p2787_p0 = pmov %p2785_p5 }
  0x5d   : > { %2023 = dma.done.wait (%p2786_p11), [#allocation10], 1024  }
  0x5e   : > { %2025 = vsyncadd (%p2787_p0), [#allocation10], 4294966272  ;;  %s324_s28 = sand.u32 1, %s2038_s0   ;;  %s1665_s30 = sshll.u32 %s2141_s17, 1 }
  0x5f   : > { %s1664_s25 = sshll.u32 %s324_s28, 4  ;;  %p328_p3 = scmp.lt.s32.totalorder %s1665_s30, 3 }
  0x60   : > { %s2245_s29 = sshll.u32 %s2141_s17, 8  ;;  %s2257_s26 = scalar_lea.vmem [#allocation11], %s1664_s25 }
  0x61   : > { %s2796_s30 = smov (!%p328_p3, %s1665_s30), 3  ;;  %s2048_s27 = smov 0  }
  0x62   : > { %s1666_s10 = sshll.u32 %s2796_s30, 3 }
  0x63   : > { %s2250_s13 = scalar_lea.vmem %s2765_s2, %s1666_s10  ;;  %s2255_s21 = scalar_lea.vmem %s2766_s3, %s1666_s10 }
  0x64 LB: >> { %s348_s17 = sadd.s32 %s2050_s27, %s2245_s29  ;;  %s351_s12 = scalar_lea.vmem [#allocation2], %s2050_s27  ;;  %s2050_s27 = sphi %s2048_s27, %s347_s27  }
  0x65   : >> { %s349_s15 = sld [smem:[#allocation5 + %s348_s17]] }
  0x6b   : >> { %s350_s11 = scalar_lea.vmem %s2764_s1, %s349_s15 }
  0x6c   : >> { %v369_v0 = vld [vmem:[%s350_s11] sm:$0x1] }
  0x6d   : >> { %370 = vst [vmem:[%s351_s12] sm:$0x1] %v369_v0 }
  0x6e   : >> { %395 = vsyncadd [#allocation3], 16  ;;  %s347_s27 = sadd.s32 1, %s2050_s27  }
  0x6f   : >> { %p344_p1 = scmp.ge.s32.totalorder %s347_s27, 16  }
  0x70   : > { %s2052_s25 = smov (%p344_p1), 0  }
  0x71   : > { %346 = sbr.rel (!%p344_p1) target bundleno = 100 (0x64), region = 197 }
  0x78 LB: >> { %2026 = dma.done.wait [#allocation3], 16  ;;  %s2054_s25 = sphi %s2052_s25, %s401_s25  }
  0x79   : >> { %2027 = vsyncadd [#allocation3], 4294967280  ;;  %s405_s10 = sadd.s32 16, %s2054_s25 }
  0x7a   : >> { %p1670_p6 = scmp.ge.s32.totalorder %s405_s10, 256 }
  0x7b   : >> { %s410_s18 = sadd.s32 (!%p1670_p6), %s2245_s29, %s405_s10  ;;  %s1572_s30 = scalar_lea.vmem (!%p1670_p6), [#allocation2], %s2054_s25 }
  0x7c   : >> { %409 = sbr.rel (%p1670_p6) target bundleno = 134 (0x86), region = 104  ;;  %s411_s20 = sld [smem:[#allocation5 + %s410_s18]] (!%p1670_p6) }
  0x82   : >> { %s412_s22 = scalar_lea.vmem (!%p1670_p6), %s2764_s1, %s411_s20 }
  0x83   : >> { %v431_v1 = vld [vmem:[%s412_s22] sm:$0x1] }
  0x84   : >> { %1672 = vst [vmem:[%s1572_s30 + $0x10] sm:$0x1] %v431_v1 }
  0x85   : >> { %457 = vsyncadd [#allocation3], 16 }
  0x86 PF: >> { %s401_s25 = sadd.s32 1, %s2054_s25  }
  0x87   : >> { %p398_p7 = scmp.ge.s32.totalorder %s401_s25, 256  }
  0x88   : > { %v780_v2 = vld [vmem:[%s2250_s13] sm:$0xff] (%p398_p7)  ;;  %v497_v3 = vld [vmem:[%s2255_s21 + $0x8] sm:$0xff] (%p398_p7)  ;;  %v500_v4 = vlaneseq (%p398_p7)  ;;  %v2061_v5 = vmov (%p398_p7), 0   ;;  %v2062_v9 = vmov (%p398_p7), 0.0   ;;  %vm2063_vm2 = vmmov (%p398_p7), 0   ;;  %s1518_s10 = sshll.u32 (%p398_p7), %s2257_s26, 4  ;;  %s2714_s17 = scalar_lea.hbm (%p398_p7), %s2772_s9, %s2245_s29  ;;  %s2717_s10 = int_to_ptr.vmem [resolvable:$true] %s1518_s10 }
  0x89   : > { %400 = sbr.rel (!%p398_p7) target bundleno = 120 (0x78), region = 208  ;;  %1842 = vset.pattern.permute.xlu0 (%p398_p7), %v2061_v5  ;;  %1843 = vset.pattern.permute.xlu1 (%p398_p7), %v2061_v5  ;;  %v781_v6 = vld [vmem:[%s2250_s13 + $0x8] sm:$0xff] (%p398_p7)  ;;  %v2270_v7 = vcvt.s32.f32 (%p398_p7), %v497_v3  ;;  %v496_v10 = vld [vmem:[%s2255_s21] sm:$0xff] (%p398_p7)  ;;  %v1116_v23 = vcvt.s32.f32 (%p398_p7), %v780_v2  ;;  %vm1262_vm3 = vcmask (%p398_p7), 1041409   ;;  %vm1265_vm4 = vcmask (%p398_p7), 1042434   ;;  %s2722_s15 = scalar_lea.sflag (%p398_p7), [#allocation8], %s324_s28 }
  0x8a   : > { %785 = vperm.xlu0 (%p398_p7), %1842, %v780_v2   ;;  %v501_v8 = vshrl.u32 (%p398_p7), %v500_v4, 7  ;;  %1718 = vmatprep.subr.bf16.mxu0 (%p398_p7), %v2062_v9  ;;  %v498_v14 = vcvt.s32.f32 (%p398_p7), %v496_v10  ;;  %v1117_v27 = vcvt.s32.f32 (%p398_p7), %v781_v6  ;;  %v783_v40 = vand.u32 (%p398_p7), 127, %v500_v4  ;;  %s1964_s22 = scalar_lea.vmem (%p398_p7), %s2717_s10, 256  ;;  %p2788_p9 = scmp.ne.s32.totalorder (%p398_p7), %s2779_s23, 0 }
  0x8b   : > { %1738 = vmatprep.subr.bf16.mxu1 (%p398_p7), %v2062_v9  ;;  %v1118_v25 = vmax.f32 (%p398_p7), %v1116_v23, 1.0  ;;  %v1849_v23 = vld [vmem:[#allocation6 + $0x28] sm:$0xff] (%p398_p7)   ;;  %1734 = vmatprep.mubr.msk.bf16.mxu0 (%p398_p7), %vm2063_vm2, %v2062_v9  ;;  %vm1268_vm5 = vcmask (%p398_p7), 1043459   ;;  %vm1271_vm6 = vcmask (%p398_p7), 1044484   ;;  %vm1274_vm7 = vcmask (%p398_p7), 1045509   ;;  %p1965_p8 = scmp.ne.s32.totalorder (%p398_p7), %s2717_s10, %s1964_s22  ;;  %s2064_s30 = smov (%p398_p7), [#allocation11]  }
  0x8c   : > { %v2276_v11 = vsub.s32 (%p398_p7), 1, %v501_v8  ;;  %v2278_v12 = vsub.s32 (%p398_p7), 2, %v501_v8  ;;  %v2284_v17 = vsub.s32 (%p398_p7), 0, %v501_v8  ;;  %v2289_v20 = vsub.s32 (%p398_p7), 3, %v501_v8  ;;  %1754 = vmatprep.mubr.msk.bf16.mxu1 (%p398_p7), %vm2063_vm2, %v2062_v9  ;;  %s1968_s29 = sshll.u32 (%p398_p7), %s2064_s30, 4  ;;  %s1969_s29 = int_to_ptr.vmem [resolvable:$false] %s1968_s29 }
  0x8d   : > { %v2296_v26 = vsub.s32 (%p398_p7), 4, %v501_v8  ;;  %v1119_v29 = vmax.f32 (%p398_p7), %v1117_v27, 1.0  ;;  %v2301_v31 = vsub.s32 (%p398_p7), 5, %v501_v8  ;;  %v2306_v34 = vsub.s32 (%p398_p7), 6, %v501_v8  ;;  %p1966_p12 = pnand (%p398_p7), %p1965_p8, %p2788_p9  ;;  %s1970_s13 = scalar_lea.vmem (%p398_p7), %s1969_s29, 512 }
  0x8e   : > { %788 = vperm.xlu0 (%p398_p7), %1842, %v781_v6   ;;  %v602_v13 = vrot.slane (%p398_p7), %v2270_v7, %v2276_v11  ;;  %v514_v15 = vrot.slane (%p398_p7), %v498_v14, %v2276_v11  ;;  %v525_v16 = vrot.slane (%p398_p7), %v498_v14, %v2278_v12  ;;  %v613_v18 = vrot.slane (%p398_p7), %v2270_v7, %v2278_v12  ;;  %v1844_v6 = vld [vmem:[#allocation6] sm:$0xff] (%p398_p7)   ;;  %p1971_p2 = scmp.lt.s32.totalorder (%p398_p7), %s2717_s10, %s1969_s29  ;;  %p1972_p4 = scmp.lt.s32.totalorder (%p398_p7), %s1970_s13, %s1964_s22 }
  0x8f   : > { %v503_v19 = vrot.slane (%p398_p7), %v498_v14, %v2284_v17  ;;  %v536_v21 = vrot.slane (%p398_p7), %v498_v14, %v2289_v20  ;;  %v591_v22 = vrot.slane (%p398_p7), %v2270_v7, %v2284_v17  ;;  %v624_v24 = vrot.slane (%p398_p7), %v2270_v7, %v2289_v20  ;;  %1719 = vmatpush3.bf16.msra.mxu0 (%p398_p7), %v1844_v6  ;;  %p1967_p13 = pneg (%p398_p7), %p1966_p12 }
  0x90   : > { %516 = vbcast.lane.b32.xlu1 %v514_v15, 256  ;;  %v547_v28 = vrot.slane %v498_v14, %v2296_v26  ;;  %v635_v30 = vrot.slane %v2270_v7, %v2296_v26  ;;  %v558_v32 = vrot.slane %v498_v14, %v2301_v31  ;;  %v646_v33 = vrot.slane %v2270_v7, %v2301_v31  ;;  %p1973_p10 = por %p1972_p4, %p1971_p2 }
  0x91   : > { %v569_v35 = vrot.slane %v498_v14, %v2306_v34  ;;  %v657_v36 = vrot.slane %v2270_v7, %v2306_v34  ;;  %v2311_v37 = vsub.s32 7, %v501_v8  ;;  %1720 = vmatprep.subr.bf16.mxu0 %v2062_v9  ;;  %vm1277_vm8 = vcmask 1046534  }
  0x92   : > { %604 = vbcast.lane.b32.xlu0 %v602_v13, 256  ;;  %vm1280_vm9 = vcmask 1047559   ;;  %p1974_p5 = pnand %p1973_p10, %p1967_p13 }
  0x93   : > { %v580_v38 = vrot.slane %v498_v14, %v2311_v37  ;;  %v668_v39 = vrot.slane %v2270_v7, %v2311_v37  ;;  %v1846_v14 = vld [vmem:[#allocation6 + $0x10] sm:$0xff]  }
  0x94   : > { %520 = vbcast.lane.b32.xlu1 %v514_v15, 264 }
  0x96   : > { %527 = vbcast.lane.b32.xlu0 %v525_v16, 256 }
  0x98   : > { %608 = vbcast.lane.b32.xlu1 %v602_v13, 264 }
  0x9a   : > { %615 = vbcast.lane.b32.xlu0 %v613_v18, 256 }
  0x9c   : > { %531 = vbcast.lane.b32.xlu1 %v525_v16, 264 }
  0x9e   : > { %505 = vbcast.lane.b32.xlu0 %v503_v19, 256 }
  0xa0   : > { %619 = vbcast.lane.b32.xlu1 %v613_v18, 264 }
  0xa2   : > { %538 = vbcast.lane.b32.xlu0 %v536_v21, 256 }
  0xa4   : > { %509 = vbcast.lane.b32.xlu1 %v503_v19, 264  ;;  %v1847_v19 = vld [vmem:[#allocation6 + $0x18] sm:$0xff]  }
  0xa6   : > { %593 = vbcast.lane.b32.xlu0 %v591_v22, 256 }
  0xa8   : > { %542 = vbcast.lane.b32.xlu1 %v536_v21, 264 }
  0xaa   : > { %626 = vbcast.lane.b32.xlu0 %v624_v24, 256 }
  0xac   : > { %597 = vbcast.lane.b32.xlu1 %v591_v22, 264  ;;  %v1848_v22 = vld [vmem:[#allocation6 + $0x20] sm:$0xff]  }
  0xae   : > { %1122 = vperm.xlu0 %1842, %v1118_v25  }
  0xb0   : > { %630 = vbcast.lane.b32.xlu1 %v624_v24, 264 }
  0xb2   : > { %549 = vbcast.lane.b32.xlu0 %v547_v28, 256 }
  0xb4   : > { %1126 = vperm.xlu1 %1843, %v1119_v29   ;;  %v1851_v29 = vld [vmem:[#allocation6 + $0x38] sm:$0xff]  }
  0xb6   : > { %637 = vbcast.lane.b32.xlu0 %v635_v30, 256 }
  0xb8   : > { %553 = vbcast.lane.b32.xlu1 %v547_v28, 264 }
  0xba   : > { %560 = vbcast.lane.b32.xlu0 %v558_v32, 256 }
  0xbc   : > { %641 = vbcast.lane.b32.xlu1 %v635_v30, 264  ;;  %v1852_v30 = vld [vmem:[#allocation9] sm:$0xff]  }
  0xbd   : > { %1739 = vmatpush3.bf16.msra.mxu1 %v1852_v30 }
  0xbe   : > { %648 = vbcast.lane.b32.xlu0 %v646_v33, 256  ;;  %1740 = vmatprep.subr.bf16.mxu1 %v2062_v9 }
  0xc0   : > { %564 = vbcast.lane.b32.xlu1 %v558_v32, 264  ;;  %v490_v32 = vld [vmem:[%s2767_s4] sm:$0x1] }
  0xc2   : > { %571 = vbcast.lane.b32.xlu0 %v569_v35, 256 }
  0xc4   : > { %652 = vbcast.lane.b32.xlu1 %v646_v33, 264 }
  0xc6   : > { %659 = vbcast.lane.b32.xlu0 %v657_v36, 256 }
  0xc8   : > { %575 = vbcast.lane.b32.xlu1 %v569_v35, 264  ;;  %v491_v35 = vunpack.c.l.bf16 %v490_v32 }
  0xca   : > { %582 = vbcast.lane.b32.xlu0 %v580_v38, 256 }
  0xcc   : > { %663 = vbcast.lane.b32.xlu1 %v657_v36, 264  ;;  %v1854_v36 = vld [vmem:[#allocation9 + $0x10] sm:$0xff]  }
  0xce   : > { %670 = vbcast.lane.b32.xlu0 %v668_v39, 256 }
  0xd0   : > { %586 = vbcast.lane.b32.xlu1 %v580_v38, 264 }
  0xd4   : > { %674 = vbcast.lane.b32.xlu1 %v668_v39, 264  ;;  %v493_v39 = vrot.slane %v491_v35, 7 }
 0x102   : > { %v2329_v48 = vpop.permute.xlu1 %516 }
 0x106   : > { %v2335_v51 = vpop.permute.xlu1 %520 }
 0x109   : > { %v786_v41 = vpop.permute.xlu0 %785 }
 0x10a   : > { %vm790_vm0 = vcmp.lt.s32.totalorder %v783_v40, %v786_v41  ;;  %v2341_v54 = vpop.permute.xlu1 %608  ;;  %v495_v41 = vsub.f32 %v491_v35, %v493_v39 }
 0x10b   : > { %v2318_v42 = vsel %vm790_vm0, 1.0, %v2062_v9 }
 0x10c   : > { %v810_v43 = vrot.slane %v2318_v42, %v2276_v11  ;;  %v821_v47 = vrot.slane %v2318_v42, %v2278_v12  ;;  %v799_v50 = vrot.slane %v2318_v42, %v2284_v17  ;;  %v832_v52 = vrot.slane %v2318_v42, %v2289_v20 }
 0x10d   : > { %v789_v44 = vpop.permute.xlu0 %788  ;;  %v843_v59 = vrot.slane %v2318_v42, %v2296_v26  ;;  %v854_v0 = vrot.slane %v2318_v42, %v2301_v31  ;;  %v865_v5 = vrot.slane %v2318_v42, %v2306_v34  ;;  %v876_v13 = vrot.slane %v2318_v42, %v2311_v37 }
 0x10e   : > { %vm791_vm1 = vcmp.lt.s32.totalorder %v783_v40, %v789_v44  ;;  %816 = vbcast.lane.b32.xlu1 %v810_v43, 264  ;;  %812 = vbcast.lane.b32.xlu0 %v810_v43, 256  ;;  %v2349_v58 = vpop.permute.xlu1 %531  ;;  %v1855_v40 = vld [vmem:[#allocation9 + $0x18] sm:$0xff]   ;;  %v2428_v44 = vrot.slane %v495_v41, %v2276_v11 }
 0x10f   : > { %v2323_v45 = vsel %vm791_vm1, 1.0, %v2062_v9 }
 0x110   : > { %v898_v46 = vrot.slane %v2323_v45, %v2276_v11  ;;  %v909_v49 = vrot.slane %v2323_v45, %v2278_v12  ;;  %v887_v55 = vrot.slane %v2323_v45, %v2284_v17  ;;  %v920_v57 = vrot.slane %v2323_v45, %v2289_v20  ;;  %v1845_v12 = vld [vmem:[#allocation6 + $0x8] sm:$0xff]  }
 0x111   : > { %v2339_v53 = vpop.permute.xlu0 %604  ;;  %v931_v62 = vrot.slane %v2323_v45, %v2296_v26  ;;  %v942_v2 = vrot.slane %v2323_v45, %v2301_v31  ;;  %v953_v8 = vrot.slane %v2323_v45, %v2306_v34  ;;  %1721 = vmatpush3.bf16.msra.mxu0 %v1845_v12  ;;  %v964_v18 = vrot.slane %v2323_v45, %v2311_v37  ;;  %v1850_v26 = vld [vmem:[#allocation6 + $0x30] sm:$0xff]   ;;  %v1853_v31 = vld [vmem:[#allocation9 + $0x8] sm:$0xff]  }
 0x112   : > { %904 = vbcast.lane.b32.xlu1 %v898_v46, 264  ;;  %900 = vbcast.lane.b32.xlu0 %v898_v46, 256  ;;  %v2355_v61 = vpop.permute.xlu1 %619  ;;  %v698_v11 = vmul.f32 %v2428_v44, %v2339_v53 }
 0x113   : > { %1722 = vmatprep.subr.bf16.mxu0 %v2062_v9  ;;  %1741 = vmatpush3.bf16.msra.mxu1 %v1853_v31 }
 0x114   : > { %1742 = vmatprep.subr.bf16.mxu1 %v2062_v9 }
 0x115   : > { %v2345_v56 = vpop.permute.xlu0 %527  ;;  %1723 = vmatpush3.bf16.msra.mxu0 %v1846_v14 }
 0x116   : > { %827 = vbcast.lane.b32.xlu1 %v821_v47, 264  ;;  %823 = vbcast.lane.b32.xlu0 %v821_v47, 256  ;;  %v2363_v1 = vpop.permute.xlu1 %509  ;;  %v2435_v47 = vrot.slane %v491_v35, %v2284_v17  ;;  %v684_v17 = vmul.f32 %v2428_v44, %v2345_v56  ;;  %v478_v35 = vld [vmem:[#allocation2 + $0xa0] sm:$0xff] }
 0x117   : > { %1724 = vmatprep.subr.bf16.mxu0 %v2062_v9  ;;  %1743 = vmatpush3.bf16.msra.mxu1 %v1854_v36  ;;  %v681_v53 = vmul.f32 %v2428_v44, %v2363_v1  ;;  %v459_v36 = vld [vmem:[#allocation2 + $0x8] sm:$0xff] }
 0x118   : > { %1744 = vmatprep.subr.bf16.mxu1 %v2062_v9  ;;  %v734_v56 = vadd.f32 %v2435_v47, %v698_v11  ;;  %v720_v12 = vadd.f32 %v2435_v47, %v684_v17  ;;  %v465_v17 = vld [vmem:[#allocation2 + $0x38] sm:$0xff] }
 0x119   : > { %v2353_v60 = vpop.permute.xlu0 %615  ;;  %1725 = vmatpush3.bf16.msra.mxu0 %v1847_v19 }
 0x11a   : > { %915 = vbcast.lane.b32.xlu1 %v909_v49, 264  ;;  %911 = vbcast.lane.b32.xlu0 %v909_v49, 256  ;;  %v2369_v4 = vpop.permute.xlu1 %542  ;;  %v682_v49 = vmul.f32 %v2428_v44, %v2329_v48 }
 0x11b   : > { %1726 = vmatprep.subr.bf16.mxu0 %v2062_v9  ;;  %1745 = vmatpush3.bf16.msra.mxu1 %v1855_v40  ;;  %v687_v1 = vmul.f32 %v2428_v44, %v2369_v4 }
 0x11c   : > { %1746 = vmatprep.subr.bf16.mxu1 %v2062_v9  ;;  %v718_v48 = vadd.f32 %v2435_v47, %v682_v49 }
 0x11d   : > { %v2359_v63 = vpop.permute.xlu0 %505  ;;  %1727 = vmatpush3.bf16.msra.mxu0 %v1848_v22 }
 0x11e   : > { %805 = vbcast.lane.b32.xlu1 %v799_v50, 264  ;;  %801 = vbcast.lane.b32.xlu0 %v799_v50, 256  ;;  %v2377_v10 = vpop.permute.xlu1 %597  ;;  %v683_v50 = vmul.f32 %v2428_v44, %v2335_v51  ;;  %v700_v51 = vmul.f32 %v2428_v44, %v2353_v60  ;;  %v463_v60 = vld [vmem:[#allocation2 + $0x28] sm:$0xff]  ;;  %v680_v22 = vmul.f32 %v2428_v44, %v2359_v63 }
 0x11f   : > { %1728 = vmatprep.subr.bf16.mxu0 %v2062_v9  ;;  %v697_v31 = vmul.f32 %v2428_v44, %v2377_v10 }
 0x120   : > { %v736_v19 = vadd.f32 %v2435_v47, %v700_v51  ;;  %v458_v51 = vld [vmem:[#allocation2] sm:$0xff] }
 0x121   : > { %v2367_v3 = vpop.permute.xlu0 %538  ;;  %1729 = vmatpush3.bf16.msra.mxu0 %v1849_v23  ;;  %v717_v23 = vadd.f32 %v2435_v47, %v681_v53 }
 0x122   : > { %838 = vbcast.lane.b32.xlu1 %v832_v52, 264  ;;  %834 = vbcast.lane.b32.xlu0 %v832_v52, 256  ;;  %v2385_v16 = vpop.permute.xlu1 %630  ;;  %v699_v52 = vmul.f32 %v2428_v44, %v2341_v54  ;;  %v686_v30 = vmul.f32 %v2428_v44, %v2367_v3 }
 0x123   : > { %1730 = vmatprep.subr.bf16.mxu0 %v2062_v9  ;;  %v703_v40 = vmul.f32 %v2428_v44, %v2385_v16  ;;  %v2501_v16 = vadd.f32 %v736_v19, %v478_v35 }
 0x124   : > { %v735_v54 = vadd.f32 %v2435_v47, %v699_v52  ;;  %v723_v52 = vadd.f32 %v2435_v47, %v687_v1 }
 0x125   : > { %v2373_v7 = vpop.permute.xlu0 %593  ;;  %1731 = vmatpush3.bf16.msra.mxu0 %v1850_v26 }
 0x126   : > { %893 = vbcast.lane.b32.xlu1 %v887_v55, 264  ;;  %889 = vbcast.lane.b32.xlu0 %v887_v55, 256  ;;  %v685_v55 = vmul.f32 %v2428_v44, %v2349_v58  ;;  %v696_v63 = vmul.f32 %v2428_v44, %v2373_v7  ;;  %v716_v7 = vadd.f32 %v2435_v47, %v680_v22 }
 0x127   : > { %1732 = vmatprep.subr.bf16.mxu0 %v2062_v9 }
 0x128   : > { %v2519_v22 = vadd.f32 %v716_v7, %v458_v51 }
 0x129   : > { %v2383_v15 = vpop.permute.xlu0 %626  ;;  %1733 = vmatpush3.bf16.msra.mxu0 %v1851_v29  ;;  %v462_v29 = vld [vmem:[#allocation2 + $0x20] sm:$0xff] }
 0x12a   : > { %926 = vbcast.lane.b32.xlu1 %v920_v57, 264  ;;  %922 = vbcast.lane.b32.xlu0 %v920_v57, 256  ;;  %v701_v57 = vmul.f32 %v2428_v44, %v2355_v61  ;;  %v461_v61 = vld [vmem:[#allocation2 + $0x18] sm:$0xff]  ;;  %v702_v10 = vmul.f32 %v2428_v44, %v2383_v15  ;;  %v2497_v11 = vadd.f32 %v720_v12, %v462_v29 }
 0x12b   : > { %v733_v15 = vadd.f32 %v2435_v47, %v697_v31 }
 0x12c   : > { %v737_v6 = vadd.f32 %v2435_v47, %v701_v57  ;;  %v2503_v57 = vadd.f32 %v717_v23, %v459_v36  ;;  %v480_v23 = vld [vmem:[#allocation2 + $0xb0] sm:$0xff] }
 0x12d   : > { %v2392_v21 = vpop.permute.xlu0 %1122 }
 0x12e   : > { %849 = vbcast.lane.b32.xlu1 %v843_v59, 264  ;;  %845 = vbcast.lane.b32.xlu0 %v843_v59, 256  ;;  %v719_v59 = vadd.f32 %v2435_v47, %v683_v50  ;;  %v1128_v39 = vrot.slane %v2392_v21, 1  ;;  %v1129_v50 = vrot.slane %v2392_v21, 2  ;;  %1860 = vrcp.f32 %v2392_v21 }
 0x12f   : > { %v1132_v53 = vrot.slane %v2392_v21, 5  ;;  %v1134_v12 = vrot.slane %v2392_v21, 7 }
 0x130   : > { %1862 = vrcp.f32 %v1128_v39 }
 0x131   : > { %v2397_v25 = vpop.permute.xlu0 %549  ;;  %1864 = vrcp.f32 %v1129_v50 }
 0x132   : > { %937 = vbcast.lane.b32.xlu1 %v931_v62, 264  ;;  %933 = vbcast.lane.b32.xlu0 %v931_v62, 256  ;;  %v688_v1 = vmul.f32 %v2428_v44, %v2397_v25 }
 0x133   : > { %v2390_v20 = vpop.permute.xlu1 %1126 }
 0x134   : > { %v1135_v25 = vrot.slane %v2390_v20, 1 }
 0x135   : > { %v2405_v28 = vpop.permute.xlu0 %637 }
 0x136   : > { %860 = vbcast.lane.b32.xlu1 %v854_v0, 264  ;;  %856 = vbcast.lane.b32.xlu0 %v854_v0, 256  ;;  %v460_v0 = vld [vmem:[#allocation2 + $0x10] sm:$0xff] }
 0x137   : > { %v2395_v24 = vpop.permute.xlu1 %553  ;;  %v750_v14 = vadd.f32 %v718_v48, %v460_v0  ;;  %v722_v48 = vadd.f32 %v2435_v47, %v686_v30  ;;  %v475_v0 = vld [vmem:[#allocation2 + $0x88] sm:$0xff] }
 0x138   : > { %v2521_v31 = vadd.f32 %v733_v15, %v475_v0  ;;  %v689_v15 = vmul.f32 %v2428_v44, %v2395_v24  ;;  %v2544_v51 = vpop.eup %1860 }
 0x139   : > { %v2413_v34 = vpop.permute.xlu0 %560 }
 0x13a   : > { %948 = vbcast.lane.b32.xlu1 %v942_v2, 264  ;;  %944 = vbcast.lane.b32.xlu0 %v942_v2, 256  ;;  %v721_v2 = vadd.f32 %v2435_v47, %v685_v55  ;;  %v1130_v55 = vrot.slane %v2392_v21, 3 }
 0x13b   : > { %v2403_v27 = vpop.permute.xlu1 %641 }
 0x13c   : > { %v2480_v32 = vadd.f32 %v721_v2, %v463_v60  ;;  %v1133_v2 = vrot.slane %v2392_v21, 6  ;;  %v481_v60 = vld [vmem:[#allocation2 + $0xb8] sm:$0xff]  ;;  %1866 = vrcp.f32 %v1130_v55 }
 0x13d   : > { %v2419_v38 = vpop.permute.xlu0 %648 }
 0x13e   : > { %871 = vbcast.lane.b32.xlu1 %v865_v5, 264  ;;  %867 = vbcast.lane.b32.xlu0 %v865_v5, 256  ;;  %v477_v5 = vld [vmem:[#allocation2 + $0x98] sm:$0xff] }
 0x13f   : > { %v2411_v33 = vpop.permute.xlu1 %564  ;;  %v2472_v26 = vadd.f32 %v735_v54, %v477_v5  ;;  %v732_v54 = vadd.f32 %v2435_v47, %v696_v63  ;;  %v2514_v5 = vadd.f32 %v723_v52, %v465_v17  ;;  %v1137_v52 = vrot.slane %v2390_v20, 3 }
 0x141   : > { %v2424_v43 = vpop.permute.xlu0 %571 }
 0x142   : > { %959 = vbcast.lane.b32.xlu1 %v953_v8, 264  ;;  %955 = vbcast.lane.b32.xlu0 %v953_v8, 256  ;;  %v476_v8 = vld [vmem:[#allocation2 + $0x90] sm:$0xff] }
 0x143   : > { %v2417_v37 = vpop.permute.xlu1 %652  ;;  %v2478_v4 = vadd.f32 %v734_v56, %v476_v8  ;;  %v738_v56 = vadd.f32 %v2435_v47, %v702_v10  ;;  %v474_v8 = vld [vmem:[#allocation2 + $0x80] sm:$0xff] }
 0x144   : > { %v2525_v36 = vadd.f32 %v732_v54, %v474_v8 }
 0x145   : > { %v2432_v46 = vpop.permute.xlu0 %659  ;;  %v2530_v39 = vadd.f32 %v738_v56, %v480_v23  ;;  %v690_v56 = vmul.f32 %v2428_v44, %v2413_v34  ;;  %v725_v23 = vadd.f32 %v2435_v47, %v689_v15 }
 0x146   : > { %882 = vbcast.lane.b32.xlu1 %v876_v13, 264  ;;  %878 = vbcast.lane.b32.xlu0 %v876_v13, 256  ;;  %v751_v13 = vadd.f32 %v719_v59, %v461_v61  ;;  %v1131_v59 = vrot.slane %v2392_v21, 4  ;;  %v739_v61 = vadd.f32 %v2435_v47, %v703_v40  ;;  %v1136_v40 = vrot.slane %v2390_v20, 2 }
 0x147   : > { %v2422_v42 = vpop.permute.xlu1 %575 }
 0x148   : > { %1868 = vrcp.f32 %v1131_v59  ;;  %v2527_v21 = vadd.f32 %v739_v61, %v481_v60  ;;  %v1139_v59 = vrot.slane %v2390_v20, 5  ;;  %v466_v61 = vld [vmem:[#allocation2 + $0x40] sm:$0xff] }
 0x149   : > { %v2460_v58 = vpop.permute.xlu0 %582  ;;  %1870 = vrcp.f32 %v1132_v53 }
 0x14a   : > { %970 = vbcast.lane.b32.xlu1 %v964_v18, 264  ;;  %966 = vbcast.lane.b32.xlu0 %v964_v18, 256  ;;  %v479_v18 = vld [vmem:[#allocation2 + $0xa8] sm:$0xff]  ;;  %1872 = vrcp.f32 %v1133_v2 }
 0x14b   : > { %v2430_v45 = vpop.permute.xlu1 %663  ;;  %v2491_v49 = vadd.f32 %v737_v6, %v479_v18  ;;  %v464_v6 = vld [vmem:[#allocation2 + $0x30] sm:$0xff]  ;;  %1874 = vrcp.f32 %v1134_v12 }
 0x14c   : > { %v2523_v35 = vadd.f32 %v722_v48, %v464_v6  ;;  %v1138_v48 = vrot.slane %v2390_v20, 4  ;;  %1876 = vrcp.f32 %v2390_v20 }
 0x14d   : > { %v2489_v3 = vpop.permute.xlu0 %670  ;;  %1878 = vrcp.f32 %v1135_v25 }
 0x14e   : > { %1880 = vrcp.f32 %v1136_v40 }
 0x14f   : > { %v2458_v62 = vpop.permute.xlu1 %586  ;;  %1882 = vrcp.f32 %v1137_v52 }
 0x150   : > { %1884 = vrcp.f32 %v1138_v48 }
 0x151   : > { %1886 = vrcp.f32 %v1139_v59 }
 0x153   : > { %v2487_v41 = vpop.permute.xlu1 %674 }
 0x180   : > { %v817_v18 = vpop.permute.xlu1 %816  ;;  %v813_v19 = vpop.permute.xlu0 %812 }
 0x181   : > { %v975_v29 = vmul.f32 %v817_v18, %v751_v13  ;;  %v974_v30 = vmul.f32 %v813_v19, %v750_v14  ;;  %v724_v13 = vadd.f32 %v2435_v47, %v688_v1  ;;  %v704_v14 = vmul.f32 %v2428_v44, %v2405_v28  ;;  %v482_v18 = vld [vmem:[#allocation2 + $0xc0] sm:$0xff] }
 0x182   : > { %v1140_v28 = vrot.slane %v2390_v20, 6 }
 0x183   : > { %v1011_v63 = vadd.f32 %v975_v29, %v974_v30  ;;  %v740_v0 = vadd.f32 %v2435_v47, %v704_v14  ;;  %v705_v29 = vmul.f32 %v2428_v44, %v2403_v27  ;;  %v2560_v34 = vadd.f32 %v724_v13, %v466_v61 }
 0x184   : > { %v905_v10 = vpop.permute.xlu1 %904  ;;  %v901_v50 = vpop.permute.xlu0 %900  ;;  %1888 = vrcp.f32 %v1140_v28 }
 0x185   : > { %v1012_v7 = vrot.slane %v1011_v63, 4  ;;  %v991_v55 = vmul.f32 %v905_v10, %v2472_v26  ;;  %v990_v17 = vmul.f32 %v901_v50, %v2478_v4  ;;  %v1863_v26 = vpop.eup %1862  ;;  %v1141_v4 = vrot.slane %v2390_v20, 7 }
 0x186   : > { %v2551_v24 = vpop.eup %1864  ;;  %v706_v10 = vmul.f32 %v2428_v44, %v2419_v38  ;;  %v2569_v27 = vadd.f32 %v740_v0, %v482_v18  ;;  %v741_v59 = vadd.f32 %v2435_v47, %v705_v29  ;;  %v691_v38 = vmul.f32 %v2428_v44, %v2411_v33 }
 0x187   : > { %v1013_v54 = vadd.f32 %v1012_v7, %v1011_v63  ;;  %v1067_v53 = vadd.f32 %v991_v55, %v990_v17  ;;  %v2555_v19 = vpop.eup %1866  ;;  %1890 = vrcp.f32 %v1141_v4 }
 0x188   : > { %v828_v2 = vpop.permute.xlu1 %827  ;;  %v824_v6 = vpop.permute.xlu0 %823  ;;  %v742_v28 = vadd.f32 %v2435_v47, %v706_v10 }
 0x189   : > { %v1014_v8 = vrot.slane %v1013_v54, 2  ;;  %v1068_v60 = vrot.slane %v1067_v53, 4  ;;  %v977_v12 = vmul.f32 %v828_v2, %v2480_v32  ;;  %v976_v1 = vmul.f32 %v824_v6, %v2497_v11  ;;  %v2562_v30 = vpop.eup %1868  ;;  %v467_v32 = vld [vmem:[#allocation2 + $0x48] sm:$0xff]  ;;  %v468_v6 = vld [vmem:[#allocation2 + $0x50] sm:$0xff] }
 0x18a   : > { %v2564_v14 = vpop.eup %1870  ;;  %v726_v11 = vadd.f32 %v2435_v47, %v690_v56  ;;  %v483_v2 = vld [vmem:[#allocation2 + $0xc8] sm:$0xff] }
 0x18b   : > { %v1015_v25 = vadd.f32 %v1014_v8, %v1013_v54  ;;  %v1069_v63 = vadd.f32 %v1068_v60, %v1067_v53  ;;  %v1018_v40 = vadd.f32 %v977_v12, %v976_v1  ;;  %v2571_v13 = vpop.eup %1872  ;;  %v2578_v53 = vadd.f32 %v725_v23, %v467_v32 }
 0x18c   : > { %v916_v50 = vpop.permute.xlu1 %915  ;;  %v912_v52 = vpop.permute.xlu0 %911  ;;  %v2595_v10 = vadd.f32 %v741_v59, %v483_v2 }
 0x18d   : > { %v1016_v7 = vrot.slane %v1015_v25, 1  ;;  %v1070_v55 = vrot.slane %v1069_v63, 2  ;;  %v1019_v17 = vrot.slane %v1018_v40, 4  ;;  %v993_v48 = vmul.f32 %v916_v50, %v2491_v49  ;;  %v2574_v15 = vpop.eup %1874 }
 0x18e   : > { %v992_v54 = vmul.f32 %v912_v52, %v2501_v16  ;;  %v2582_v8 = vpop.eup %1876  ;;  %v707_v49 = vmul.f32 %v2428_v44, %v2417_v37  ;;  %v692_v16 = vmul.f32 %v2428_v44, %v2424_v43  ;;  %v2597_v50 = vadd.f32 %v726_v11, %v468_v6 }
 0x18f   : > { %v1017_v61 = vadd.f32 %v1016_v7, %v1015_v25  ;;  %v1071_v0 = vadd.f32 %v1070_v55, %v1069_v63  ;;  %v1020_v56 = vadd.f32 %v1019_v17, %v1018_v40  ;;  %v1879_v18 = vpop.eup %1878  ;;  %v484_v63 = vld [vmem:[#allocation2 + $0xd0] sm:$0xff]  ;;  %v727_v43 = vadd.f32 %v2435_v47, %v691_v38 }
 0x190   : > { %v1074_v60 = vadd.f32 %v993_v48, %v992_v54  ;;  %v806_v12 = vpop.permute.xlu1 %805  ;;  %v802_v1 = vpop.permute.xlu0 %801  ;;  %v2605_v59 = vadd.f32 %v742_v28, %v484_v63  ;;  %v743_v38 = vadd.f32 %v2435_v47, %v707_v49  ;;  %v694_v49 = vmul.f32 %v2428_v44, %v2460_v58 }
 0x191   : > { %v2589_v33 = vmul.f32 %v1863_v26, %v1017_v61  ;;  %v1072_v23 = vrot.slane %v1071_v0, 1  ;;  %v1021_v29 = vrot.slane %v1020_v56, 2  ;;  %v973_v25 = vmul.f32 %v806_v12, %v2503_v57  ;;  %v2592_v40 = vpop.eup %1880 }
 0x192   : > { %v1075_v32 = vrot.slane %v1074_v60, 4  ;;  %v972_v37 = vmul.f32 %v802_v1, %v2519_v22  ;;  %v708_v26 = vmul.f32 %v2428_v44, %v2432_v46  ;;  %v2602_v55 = vpop.eup %1882  ;;  %v728_v57 = vadd.f32 %v2435_v47, %v692_v16  ;;  %v469_v22 = vld [vmem:[#allocation2 + $0x58] sm:$0xff] }
 0x193   : > { %v1073_v52 = vadd.f32 %v1072_v23, %v1071_v0  ;;  %v1022_v7 = vadd.f32 %v1021_v29, %v1020_v56  ;;  %v2607_v11 = vpop.eup %1884  ;;  %v470_v56 = vld [vmem:[#allocation2 + $0x60] sm:$0xff]  ;;  %v693_v16 = vmul.f32 %v2428_v44, %v2422_v42  ;;  %v485_v1 = vld [vmem:[#allocation2 + $0xd8] sm:$0xff]  ;;  %v2621_v29 = vadd.f32 %v727_v43, %v469_v22 }
 0x194   : > { %v1076_v17 = vadd.f32 %v1075_v32, %v1074_v60  ;;  %v1004_v48 = vadd.f32 %v973_v25, %v972_v37  ;;  %v839_v54 = vpop.permute.xlu1 %838  ;;  %v835_v61 = vpop.permute.xlu0 %834  ;;  %v744_v23 = vadd.f32 %v2435_v47, %v708_v26  ;;  %v2630_v58 = vadd.f32 %v743_v38, %v485_v1 }
 0x195   : > { %v2610_v2 = vmul.f32 %v1879_v18, %v1073_v52  ;;  %v1023_v46 = vrot.slane %v1022_v7, 1  ;;  %v979_v0 = vmul.f32 %v839_v54, %v2514_v5  ;;  %v2613_v6 = vpop.eup %1886  ;;  %v978_v28 = vmul.f32 %v835_v61, %v2523_v35  ;;  %v486_v54 = vld [vmem:[#allocation2 + $0xe0] sm:$0xff] }
 0x196   : > { %v1077_v60 = vrot.slane %v1076_v17, 2  ;;  %v1005_v12 = vrot.slane %v1004_v48, 4  ;;  %v2623_v5 = vpop.eup %1888  ;;  %v2625_v52 = vadd.f32 %v728_v57, %v470_v56  ;;  %v729_v43 = vadd.f32 %v2435_v47, %v693_v16 }
 0x197   : > { %v1024_v18 = vadd.f32 %v1023_v46, %v1022_v7  ;;  %v1025_v32 = vadd.f32 %v979_v0, %v978_v28  ;;  %v730_v57 = vadd.f32 %v2435_v47, %v694_v49  ;;  %v471_v0 = vld [vmem:[#allocation2 + $0x68] sm:$0xff]  ;;  %v2636_v56 = vadd.f32 %v744_v23, %v486_v54 }
 0x198   : > { %v1078_v25 = vadd.f32 %v1077_v60, %v1076_v17  ;;  %v1006_v63 = vadd.f32 %v1005_v12, %v1004_v48  ;;  %v894_v37 = vpop.permute.xlu1 %893  ;;  %v890_v42 = vpop.permute.xlu0 %889  ;;  %v709_v48 = vmul.f32 %v2428_v44, %v2430_v45  ;;  %v472_v12 = vld [vmem:[#allocation2 + $0x70] sm:$0xff]  ;;  %v2642_v28 = vmul.f32 %v2428_v44, %v2489_v3 }
 0x199   : > { %v1163_v35 = vmul.f32 %v2551_v24, %v1024_v18  ;;  %v989_v26 = vmul.f32 %v894_v37, %v2521_v31  ;;  %v988_v61 = vmul.f32 %v890_v42, %v2525_v36  ;;  %v1026_v17 = vrot.slane %v1025_v32, 4 }
 0x19a   : > { %v1079_v7 = vrot.slane %v1078_v25, 1  ;;  %v1007_v22 = vrot.slane %v1006_v63, 2  ;;  %v1191_v31 = vpack.c.bf16 %v2589_v33, %v2589_v33  ;;  %v2649_v42 = vadd.f32 %v730_v57, %v472_v12 }
 0x19b   : > { %v1060_v46 = vadd.f32 %v989_v26, %v988_v61  ;;  %v1027_v38 = vadd.f32 %v1026_v17, %v1025_v32  ;;  %v2652_v3 = vadd.f32 %v2435_v47, %v709_v48  ;;  %v1199_v17 = vpack.c.bf16 %v2610_v2, %v2610_v2 }
 0x19c   : > { %v1080_v36 = vadd.f32 %v1079_v7, %v1078_v25  ;;  %v1008_v24 = vadd.f32 %v1007_v22, %v1006_v63  ;;  %v927_v60 = vpop.permute.xlu1 %926  ;;  %v923_v16 = vpop.permute.xlu0 %922  ;;  %v2647_v25 = vadd.f32 %v729_v43, %v471_v0  ;;  %v1192_v63 = vpack.c.bf16 %v1163_v35, %v1163_v35 }
 0x19d   : > { %v1061_v45 = vrot.slane %v1060_v46, 4  ;;  %v995_v1 = vmul.f32 %v927_v60, %v2527_v21  ;;  %v994_v23 = vmul.f32 %v923_v16, %v2530_v39  ;;  %v1028_v33 = vrot.slane %v1027_v38, 2 }
 0x19e   : > { %v1179_v49 = vmul.f32 %v2592_v40, %v1080_v36  ;;  %v1009_v18 = vrot.slane %v1008_v24, 1  ;;  %v1246_v54 = vunpack.c.l.b16 %v1191_v31  ;;  %v695_v35 = vmul.f32 %v2428_v44, %v2458_v62 }
 0x19f   : > { %v1062_v32 = vadd.f32 %v1061_v45, %v1060_v46  ;;  %v1081_v37 = vadd.f32 %v995_v1, %v994_v23  ;;  %v1029_v21 = vadd.f32 %v1028_v33, %v1027_v38  ;;  %v1247_v46 = vunpack.c.l.b16 %v1192_v63 }
 0x1a0   : > { %v1010_v26 = vadd.f32 %v1009_v18, %v1008_v24  ;;  %v850_v61 = vpop.permute.xlu1 %849  ;;  %v846_v39 = vpop.permute.xlu0 %845  ;;  %v1261_v24 = vrot.slane %v1246_v54, 7  ;;  %v1200_v38 = vpack.c.bf16 %v1179_v49, %v1179_v49  ;;  %v1254_v2 = vunpack.c.l.b16 %v1199_v17 }
 0x1a1   : > { %v1063_v7 = vrot.slane %v1062_v32, 2  ;;  %v1082_v40 = vrot.slane %v1081_v37, 4  ;;  %v981_v22 = vmul.f32 %v850_v61, %v2578_v53  ;;  %v980_v43 = vmul.f32 %v846_v39, %v2560_v34 }
 0x1a2   : > { %v1159_v48 = vmul.f32 %v2544_v51, %v1010_v26  ;;  %v1030_v57 = vrot.slane %v1029_v21, 1  ;;  %v1264_v33 = vrot.slane %v1247_v46, 6  ;;  %v1255_v49 = vunpack.c.l.b16 %v1200_v38 }
 0x1a3   : > { %v1064_v0 = vadd.f32 %v1063_v7, %v1062_v32  ;;  %v1083_v31 = vadd.f32 %v1082_v40, %v1081_v37  ;;  %v1032_v36 = vadd.f32 %v981_v22, %v980_v43 }
 0x1a4   : > { %v1190_v60 = vpack.c.bf16 %v1159_v48, %v1159_v48  ;;  %v1031_v53 = vadd.f32 %v1030_v57, %v1029_v21  ;;  %v938_v16 = vpop.permute.xlu1 %937  ;;  %v934_v34 = vpop.permute.xlu0 %933  ;;  %v1282_v48 = vrot.slane %v1254_v2, 7 }
 0x1a5   : > { %v1065_v12 = vrot.slane %v1064_v0, 1  ;;  %v1084_v45 = vrot.slane %v1083_v31, 2  ;;  %v1033_v62 = vrot.slane %v1032_v36, 4  ;;  %v997_v1 = vmul.f32 %v938_v16, %v2595_v10 }
 0x1a6   : > { %v1245_v23 = vunpack.c.l.b16 %v1190_v60  ;;  %v1165_v51 = vmul.f32 %v2555_v19, %v1031_v53  ;;  %v996_v18 = vmul.f32 %v934_v34, %v2569_v27 }
 0x1a7   : > { %v1066_v63 = vadd.f32 %v1065_v12, %v1064_v0  ;;  %v1085_v32 = vadd.f32 %v1084_v45, %v1083_v31  ;;  %v1034_v37 = vadd.f32 %v1033_v62, %v1032_v36  ;;  %v1284_v31 = vrot.slane %v1255_v49, 6 }
 0x1a8   : > { %v1263_v54 = vsel %vm1262_vm3, %v1261_v24, %v1245_v23  ;;  %v1193_v26 = vpack.c.bf16 %v1165_v51, %v1165_v51  ;;  %v1088_v21 = vadd.f32 %v997_v1, %v996_v18  ;;  %v861_v61 = vpop.permute.xlu1 %860  ;;  %v857_v39 = vpop.permute.xlu0 %856  ;;  %v731_v1 = vadd.f32 %v2435_v47, %v695_v35  ;;  %v487_v18 = vld [vmem:[#allocation2 + $0xe8] sm:$0xff] }
 0x1a9   : > { %v1175_v7 = vmul.f32 %v2582_v8, %v1066_v63  ;;  %v1086_v10 = vrot.slane %v1085_v32, 1  ;;  %v1035_v40 = vrot.slane %v1034_v37, 2  ;;  %v983_v22 = vmul.f32 %v861_v61, %v2621_v29 }
 0x1aa   : > { %v1248_v19 = vunpack.c.l.b16 %v1193_v26  ;;  %v1089_v43 = vrot.slane %v1088_v21, 4  ;;  %v982_v27 = vmul.f32 %v857_v39, %v2597_v50  ;;  %v1266_v17 = vsel %vm1265_vm4, %v1264_v33, %v1263_v54  ;;  %v473_v26 = vld [vmem:[#allocation2 + $0x78] sm:$0xff] }
 0x1ab   : > { %v1198_v57 = vpack.c.bf16 %v1175_v7, %v1175_v7  ;;  %v1087_v46 = vadd.f32 %v1086_v10, %v1085_v32  ;;  %v1036_v0 = vadd.f32 %v1035_v40, %v1034_v37  ;;  %v777_v7 = vadd.f32 %v2652_v3, %v487_v18 }
 0x1ac   : > { %v1267_v36 = vrot.slane %v1248_v19, 5  ;;  %v1090_v24 = vadd.f32 %v1089_v43, %v1088_v21  ;;  %v1039_v38 = vadd.f32 %v983_v22, %v982_v27  ;;  %v949_v60 = vpop.permute.xlu1 %948  ;;  %v945_v8 = vpop.permute.xlu0 %944  ;;  %v711_v10 = vmul.f32 %v2428_v44, %v2487_v41 }
 0x1ad   : > { %v1253_v53 = vunpack.c.l.b16 %v1198_v57  ;;  %v1181_v16 = vmul.f32 %v2602_v55, %v1087_v46  ;;  %v1037_v29 = vrot.slane %v1036_v0, 1  ;;  %v999_v34 = vmul.f32 %v949_v60, %v2630_v58 }
 0x1ae   : > { %v1091_v12 = vrot.slane %v1090_v24, 2  ;;  %v1040_v50 = vrot.slane %v1039_v38, 4  ;;  %v998_v45 = vmul.f32 %v945_v8, %v2605_v59  ;;  %v1269_v62 = vsel %vm1268_vm5, %v1267_v36, %v1266_v17 }
 0x1af   : > { %v1283_v2 = vsel %vm1262_vm3, %v1282_v48, %v1253_v53  ;;  %v1201_v23 = vpack.c.bf16 %v1181_v16, %v1181_v16  ;;  %v1038_v51 = vadd.f32 %v1037_v29, %v1036_v0  ;;  %v747_v41 = vadd.f32 %v2435_v47, %v711_v10 }
 0x1b0   : > { %v1092_v33 = vadd.f32 %v1091_v12, %v1090_v24  ;;  %v1041_v63 = vadd.f32 %v1040_v50, %v1039_v38  ;;  %v1095_v55 = vadd.f32 %v999_v34, %v998_v45  ;;  %v872_v32 = vpop.permute.xlu1 %871  ;;  %v868_v37 = vpop.permute.xlu0 %867  ;;  %v1285_v58 = vsel %vm1265_vm4, %v1284_v31, %v1283_v2  ;;  %v488_v2 = vld [vmem:[#allocation2 + $0xf0] sm:$0xff] }
 0x1b1   : > { %v1256_v49 = vunpack.c.l.b16 %v1201_v23  ;;  %v1167_v59 = vmul.f32 %v2562_v30, %v1038_v51  ;;  %v985_v54 = vmul.f32 %v872_v32, %v2647_v25  ;;  %v984_v35 = vmul.f32 %v868_v37, %v2625_v52 }
 0x1b2   : > { %v1093_v21 = vrot.slane %v1092_v33, 1  ;;  %v1042_v61 = vrot.slane %v1041_v63, 2  ;;  %v1096_v39 = vrot.slane %v1095_v55, 4  ;;  %v763_v25 = vadd.f32 %v731_v1, %v473_v26 }
 0x1b3   : > { %v1286_v40 = vrot.slane %v1256_v49, 5  ;;  %v1194_v22 = vpack.c.bf16 %v1167_v59, %v1167_v59  ;;  %v1046_v19 = vadd.f32 %v985_v54, %v984_v35  ;;  %v746_v8 = vadd.f32 %v2435_v47, %v2642_v28 }
 0x1b4   : > { %v1094_v43 = vadd.f32 %v1093_v21, %v1092_v33  ;;  %v1043_v27 = vadd.f32 %v1042_v61, %v1041_v63  ;;  %v1097_v17 = vadd.f32 %v1096_v39, %v1095_v55  ;;  %v960_v30 = vpop.permute.xlu1 %959  ;;  %v956_v48 = vpop.permute.xlu0 %955 }
 0x1b5   : > { %v1249_v57 = vunpack.c.l.b16 %v1194_v22  ;;  %v1047_v52 = vrot.slane %v1046_v19, 4  ;;  %v1001_v46 = vmul.f32 %v960_v30, %v777_v7  ;;  %v1000_v0 = vmul.f32 %v956_v48, %v2636_v56  ;;  %v489_v56 = vld [vmem:[#allocation2 + $0xf8] sm:$0xff] }
 0x1b6   : > { %v1183_v31 = vmul.f32 %v2607_v11, %v1094_v43  ;;  %v1044_v3 = vrot.slane %v1043_v27, 1  ;;  %v1098_v36 = vrot.slane %v1097_v17, 2  ;;  %v1287_v44 = vsel %vm1268_vm5, %v1286_v40, %v1285_v58 }
 0x1b7   : > { %v1270_v24 = vrot.slane %v1249_v57, 4  ;;  %v1048_v38 = vadd.f32 %v1047_v52, %v1046_v19  ;;  %v1102_v60 = vadd.f32 %v1001_v46, %v1000_v0  ;;  %v779_v55 = vadd.f32 %v747_v41, %v489_v56  ;;  %v1891_v56 = vpop.eup %1890 }
 0x1b8   : > { %v1202_v53 = vpack.c.bf16 %v1183_v31, %v1183_v31  ;;  %v1045_v16 = vadd.f32 %v1044_v3, %v1043_v27  ;;  %v1099_v29 = vadd.f32 %v1098_v36, %v1097_v17  ;;  %v883_v34 = vpop.permute.xlu1 %882  ;;  %v879_v12 = vpop.permute.xlu0 %878  ;;  %v778_v54 = vadd.f32 %v746_v8, %v488_v2 }
 0x1b9   : > { %v1049_v50 = vrot.slane %v1048_v38, 2  ;;  %v1103_v11 = vrot.slane %v1102_v60, 4  ;;  %v987_v45 = vmul.f32 %v883_v34, %v763_v25  ;;  %v986_v1 = vmul.f32 %v879_v12, %v2649_v42 }
 0x1ba   : > { %v1257_v23 = vunpack.c.l.b16 %v1202_v53  ;;  %v1169_v51 = vmul.f32 %v2564_v14, %v1045_v16  ;;  %v1100_v18 = vrot.slane %v1099_v29, 1  ;;  %v1272_v33 = vsel %vm1271_vm6, %v1270_v24, %v1269_v62 }
 0x1bb   : > { %v1050_v63 = vadd.f32 %v1049_v50, %v1048_v38  ;;  %v1104_v47 = vadd.f32 %v1103_v11, %v1102_v60  ;;  %v1053_v28 = vadd.f32 %v987_v45, %v986_v1 }
 0x1bc   : > { %v1288_v32 = vrot.slane %v1257_v23, 4  ;;  %v1195_v37 = vpack.c.bf16 %v1169_v51, %v1169_v51  ;;  %v1101_v58 = vadd.f32 %v1100_v18, %v1099_v29  ;;  %v971_v49 = vpop.permute.xlu1 %970  ;;  %v967_v59 = vpop.permute.xlu0 %966 }
 0x1bd   : > { %v1051_v35 = vrot.slane %v1050_v63, 1  ;;  %v1105_v26 = vrot.slane %v1104_v47, 2  ;;  %v1054_v42 = vrot.slane %v1053_v28, 4  ;;  %v1003_v21 = vmul.f32 %v971_v49, %v779_v55  ;;  %v1675_v55 = vld [vmem:[%s2769_s6] ss:$0 sm:$0xff] }
 0x1be   : > { %v1250_v61 = vunpack.c.l.b16 %v1195_v37  ;;  %v1185_v14 = vmul.f32 %v2613_v6, %v1101_v58  ;;  %v1002_v39 = vmul.f32 %v967_v59, %v778_v54  ;;  %v1289_v62 = vsel %vm1271_vm6, %v1288_v32, %v1287_v44 }
 0x1bf   : > { %v1052_v7 = vadd.f32 %v1051_v35, %v1050_v63  ;;  %v1106_v10 = vadd.f32 %v1105_v26, %v1104_v47  ;;  %v1055_v40 = vadd.f32 %v1054_v42, %v1053_v28  ;;  %v1856_v63 = vld [vmem:[#allocation9 + $0x20] sm:$0xff]   ;;  %v1858_v47 = vld [vmem:[#allocation9 + $0x30] sm:$0xff]   ;;  %v1859_v28 = vld [vmem:[#allocation9 + $0x38] sm:$0xff]  }
 0x1c0   : > { %v1273_v22 = vrot.slane %v1250_v61, 3  ;;  %v1203_v19 = vpack.c.bf16 %v1185_v14, %v1185_v14  ;;  %v1109_v43 = vadd.f32 %v1003_v21, %v1002_v39  ;;  %1747 = vmatpush3.bf16.msra.mxu1 %v1856_v63  ;;  %v1684_v42 = vld [vmem:[%s2771_s8] ss:$0 sm:$0xff] }
 0x1c1   : > { %v1171_v27 = vmul.f32 %v2571_v13, %v1052_v7  ;;  %v1107_v17 = vrot.slane %v1106_v10, 1  ;;  %v1056_v30 = vrot.slane %v1055_v40, 2  ;;  %1748 = vmatprep.subr.bf16.mxu1 %v2062_v9 }
 0x1c2   : > { %v1258_v48 = vunpack.c.l.b16 %v1203_v19  ;;  %v1110_v25 = vrot.slane %v1109_v43, 4  ;;  %v1275_v57 = vsel %vm1274_vm7, %v1273_v22, %v1272_v33 }
 0x1c3   : > { %v1196_v6 = vpack.c.bf16 %v1171_v27, %v1171_v27  ;;  %v1108_v52 = vadd.f32 %v1107_v17, %v1106_v10  ;;  %v1057_v46 = vadd.f32 %v1056_v30, %v1055_v40 }
 0x1c4   : > { %v1290_v0 = vrot.slane %v1258_v48, 3  ;;  %v1111_v31 = vadd.f32 %v1110_v25, %v1109_v43 }
 0x1c5   : > { %v1251_v3 = vunpack.c.l.b16 %v1196_v6  ;;  %v1187_v36 = vmul.f32 %v2623_v5, %v1108_v52  ;;  %v1058_v44 = vrot.slane %v1057_v46, 1 }
 0x1c6   : > { %v1112_v41 = vrot.slane %v1111_v31, 2  ;;  %v1291_v13 = vsel %vm1274_vm7, %v1290_v0, %v1289_v62 }
 0x1c7   : > { %v1204_v24 = vpack.c.bf16 %v1187_v36, %v1187_v36  ;;  %v1059_v38 = vadd.f32 %v1058_v44, %v1057_v46  ;;  %v1276_v60 = vrot.slane %v1251_v3, 2 }
 0x1c8   : > { %v1113_v8 = vadd.f32 %v1112_v41, %v1111_v31 }
 0x1c9   : > { %v1259_v53 = vunpack.c.l.b16 %v1204_v24  ;;  %v1173_v20 = vmul.f32 %v2574_v15, %v1059_v38  ;;  %v1278_v4 = vsel %vm1277_vm8, %v1276_v60, %v1275_v57  ;;  %v1857_v15 = vld [vmem:[#allocation9 + $0x28] sm:$0xff]  }
 0x1ca   : > { %v1114_v16 = vrot.slane %v1113_v8, 1  ;;  %1749 = vmatpush3.bf16.msra.mxu1 %v1857_v15 }
 0x1cb   : > { %v1197_v29 = vpack.c.bf16 %v1173_v20, %v1173_v20  ;;  %v1292_v34 = vrot.slane %v1259_v53, 2  ;;  %1750 = vmatprep.subr.bf16.mxu1 %v2062_v9 }
 0x1cc   : > { %v1115_v12 = vadd.f32 %v1114_v16, %v1113_v8 }
 0x1cd   : > { %v1252_v50 = vunpack.c.l.b16 %v1197_v29  ;;  %v1293_v5 = vsel %vm1277_vm8, %v1292_v34, %v1291_v13 }
 0x1ce   : > { %v1189_v11 = vmul.f32 %v1891_v56, %v1115_v12  ;;  %1751 = vmatpush3.bf16.msra.mxu1 %v1858_v47 }
 0x1cf   : > { %v1279_v45 = vrot.slane %v1252_v50, 1  ;;  %1752 = vmatprep.subr.bf16.mxu1 %v2062_v9 }
 0x1d0   : > { %v1205_v1 = vpack.c.bf16 %v1189_v11, %v1189_v11 }
 0x1d1   : > { %v1281_v2 = vsel %vm1280_vm9, %v1279_v45, %v1278_v4 }
 0x1d2   : > { %v1260_v23 = vunpack.c.l.b16 %v1205_v1  ;;  %1753 = vmatpush3.bf16.msra.mxu1 %v1859_v28 }
 0x1d4   : > { %v1294_v51 = vrot.slane %v1260_v23, 1 }
 0x1d6   : > { %v1295_v18 = vsel %vm1280_vm9, %v1294_v51, %v1293_v5 }
 0x1d7   : > { %v1296_v33 = vpack.c.b16 %v1295_v18, %v1281_v2 }
 0x1d9   : > { %1735 = vmatmul.mubr.bf16.vlgmr.msra.gmra.mrb[0].mxu0 %v1296_v33 }
 0x2ac   : > { %v1380_v32 = vpop.f32.mrb[0].mxu0 }
 0x2ad   : > { %v1381_v37 = vadd.f32 %v1675_v55, %v1380_v32  ;;  %v1736_v58 = vpop.f32.mrb[1].mxu0 }
 0x2ae   : > { %v1383_v49 = vpop.f32.mrb[2].mxu0 }
 0x2af   : > { %v1384_v59 = vadd.f32 %v1675_v55, %v1383_v49  ;;  %v1737_v54 = vpop.f32.mrb[3].mxu0  ;;  %1892 = vtanh.f32 %v1381_v37 }
 0x2b1   : > { %1894 = vtanh.f32 %v1384_v59 }
 0x2b9   : > { %v1893_v35 = vpop.eup %1892 }
 0x2bb   : > { %v1895_v9 = vpop.eup %1894 }
 0x2bc   : > { %v1389_v26 = vpack.c.bf16 %v1895_v9, %v1893_v35 }
 0x2be   : > { %1755 = vmatmul.mubr.bf16.vlgmr.msra.gmra.mrb[0].mxu1 %v1389_v26 }
 0x391   : > { %v1495_v21 = vpop.f32.mrb[0].mxu1 }
 0x392   : > { %v1496_v61 = vadd.f32 %v1684_v42, %v1495_v21  ;;  %v1756_v14 = vpop.f32.mrb[1].mxu1 }
 0x393   : > { %v1498_v39 = vpop.f32.mrb[2].mxu1 }
 0x394   : > { %1502 = vst [vmem:[%s2257_s26] sm:$0xff] %v1496_v61  ;;  %v1499_v62 = vadd.f32 %v1684_v42, %v1498_v39  ;;  %v1757_v7 = vpop.f32.mrb[3].mxu1 }
 0x396   : > { %1503 = vst [vmem:[%s2257_s26 + $0x8] sm:$0xff] %v1499_v62 }
 0x397   : > { %1977 = shalt.err (!%p1974_p5)
}
 0x398   : > { %s1978_s28 = scalar_lea.hbm %s2714_s17, 256  ;;  %s1982_s27 = scalar_lea.hbm %s2772_s9, 512 }
 0x399   : > { %p1979_p11 = scmp.ne.s32.totalorder %s2714_s17, %s1978_s28  ;;  %p1983_p1 = scmp.lt.u32.totalorder %s2714_s17, %s2772_s9 }
 0x39a   : > { %p1984_p6 = scmp.lt.u32.totalorder %s1982_s27, %s1978_s28  ;;  %p1986_p8 = scmp.lt.u32.totalorder %s1978_s28, %s2714_s17 }
 0x39b   : > { %p1980_p0 = pnand %p1979_p11, %p2788_p9 }
 0x39c   : > { %p1985_p7 = por %p1984_p6, %p1983_p1 }
 0x39d   : > { %p1981_p3 = pneg %p1980_p0 }
 0x39e   : > { %p1987_p12 = por %p1986_p8, %p1985_p7 }
 0x3a0   : > { %p1988_p13 = pnand %p1987_p12, %p1981_p3 }
 0x3a2   : > { %1991 = shalt.err (!%p1988_p13)
}
 0x3a3   : > { %s2065_s25 = smov 128   ;;  %s2066_s18 = smov 8  }
 0x3a4   : > { %1766 = dma.vmem_to_hbm [thread:$0]  (%p2788_p9), %s2717_s10, 256, %s2714_s17, %s2722_s15, %s2065_s25, %s2065_s25, %s2066_s18  }
 0x3a5 PF: > { %p1783_p2 = scmp.ge.s32.totalorder %s2046_s16, 2  ;;  %s1533_s20 = sand.u32 1, %s2034_s14  }
 0x3a6   : > { %p2789_p4 = scmp.ne.s32.totalorder %s2780_s24, 0  ;;  %s1534_s22 = scalar_lea.sflag [#allocation8], %s1533_s20 }
 0x3a8   : > { %p1776_p10 = pnand %p1783_p2, %p2789_p4 }
 0x3aa   : > { %2029 = dma.done.wait (!%p1776_p10), %s1534_s22, 256  }
 0x3ab   : > { %2031 = vsyncadd (!%p1776_p10), %s1534_s22, 4294967040  ;;  %s2790_s30 = sld [smem:[#allocation19_spill]]  ;;  %s2791_s15 = sld [smem:[#allocation20_spill]] }
 0x3ac   : > { %p27_p5 = scmp.ge.s32.totalorder %s2145_s19, 4   ;;  %s2792_s14 = smov %s2038_s0 }
 0x3ad   : > { %s2794_s16 = smov %s2145_s19 }
 0x3ae   :  { %29 = sbr.rel (!%p27_p5) target bundleno = 20 (0x14), region = 219 }
 0x3b1   : > { %s2793_s0 = smov %s2790_s30 }
 0x3b5   :  { %1539 = vsyncpa [#allocation7], 1 }
 0x3b6   :  { %1541 = vsyncpa [#allocation7 + $0x1], 1 }
 0x3b7   :  { %1542 = vsyncpa [#allocation10], 1 }
 0x3b8   :  { %1543 = vsyncpa [#allocation8], 1 }
 0x3b9   :  { %1545 = vsyncpa [#allocation8 + $0x1], 1 }
 0x3ba   :  { %1546 = vsyncmov [#allocation3] }
 0x3bd   :  { %s1547_s16 = vpop.sfrf %1546 }
 0x3be   :  { %p1698_p9 = scmp.ne.s32.totalorder %s1547_s16, 0 }
 0x3c0   :  { %1551 = shalt.err (%p1698_p9)  }

</bundles_post_ra>
